<compile_context>
chip_gen: v7x
topology: tpu7x:2x2x1
jax: 0.10.0
libtpu: 0.0.40
codegen_flags: <defaults>
</compile_context>

<pallas_src>
import jax
import jax.numpy as jnp
from jax.experimental import pallas as pl
from jax.experimental.pallas import tpu as pltpu

# ---------------- configuration (small shapes) ----------------
IMAGE_SIZE = 16
PATCH_SIZE = 8
CHANNELS = 4
DIM = 32
DEPTH = 2
HEADS = 4
DIM_HEAD = 8
MLP_DIM = 64
NUM_CLASSES = 10
POOL = "cls"

INNER = HEADS * DIM_HEAD                        # 32
NUM_PATCHES = (IMAGE_SIZE // PATCH_SIZE) ** 2   # 4
PATCH_DIM = CHANNELS * PATCH_SIZE * PATCH_SIZE  # 256
SEQ = NUM_PATCHES + 1                           # 5 (cls token + patches)
N_PAD = 8                                       # SEQ padded to sublane multiple
EPS = 1e-5                                      # torch.nn.LayerNorm default
SCALE = DIM_HEAD ** -0.5
CLS_PAD = 128                                   # lane-dense head output width
MISC_ROWS = N_PAD + 1 + 4 * DEPTH               # token_add + head_bias + biases


# ---------------- in-kernel helpers ----------------
def _erf(x):
    # Exact-GELU erf via Numerical Recipes erfc approximation; the inner
    # divide goes to the EUP via pl.reciprocal(approx=True).
    a = jnp.abs(x)
    t = pl.reciprocal(1.0 + 0.5 * a, approx=True)
    y = t * jnp.exp(
        -a * a - 1.26551223 + t * (1.00002368 + t * (0.37409196 + t * (0.09678418
        + t * (-0.18628806 + t * (0.27886807 + t * (-1.13520398 + t * (1.48851587
        + t * (-0.82215223 + t * 0.17087277))))))))
    )
    erfc = jnp.where(x >= 0.0, y, 2.0 - y)
    return 1.0 - erfc


def _gelu(x):
    # PyTorch nn.GELU() default (exact, erf based).
    return 0.5 * x * (1.0 + _erf(x * 0.7071067811865476))


def _norm(x):
    # LayerNorm with gamma/beta folded into the following linear weights
    # (done offline in vit_forward); only the normalization stays here.
    mu = jnp.mean(x, axis=-1, keepdims=True)
    var = jnp.mean(jnp.square(x - mu), axis=-1, keepdims=True)
    return (x - mu) * jax.lax.rsqrt(var + EPS)


# ---------------- fused ViT kernel ----------------
def _vit_kernel(
    patches_ref, pe_w_ref, wqkv_ref, wo_ref, w1_ref, w2_ref,
    head_w_ref, misc_ref, o_ref,
):
    bn = patches_ref.shape[0]          # B_TILE * N_PAD (static)
    bsz = bn // N_PAD                  # B_TILE

    # Patch embedding; cls-token / patch-embed bias / pos-embedding add is a
    # single (N_PAD, DIM) slab broadcast over the batch (no host-side tile).
    x = jnp.dot(patches_ref[...], pe_w_ref[...], preferred_element_type=jnp.float32)
    tok_add = misc_ref[0:N_PAD, 0:DIM]                       # (N_PAD, DIM)
    x = (x.reshape(bsz, N_PAD, DIM) + tok_add[None]).reshape(bn, DIM)

    # Key-padding mask over the merged (head*batch) score tensor, built once.
    Z = HEADS * bsz
    key_valid = jax.lax.broadcasted_iota(jnp.int32, (Z, N_PAD, N_PAD), 2) < SEQ
    neg_big = jnp.float32(-1e30)

    for l in range(DEPTH):                                    # static unroll
        base = N_PAD + 1 + 4 * l                              # misc-slab row base

        # ---------- PreNorm(Attention) + residual ----------
        h = _norm(x)
        qkv = (
            jnp.dot(h, wqkv_ref[l], preferred_element_type=jnp.float32)
            + misc_ref[base:base + 1, 0:3 * INNER]            # folded LN beta
        )                                                     # (bn, 3*INNER)
        q3 = qkv[:, 0 * INNER:1 * INNER].reshape(bsz, N_PAD, INNER)
        k3 = qkv[:, 1 * INNER:2 * INNER].reshape(bsz, N_PAD, INNER)
        v3 = qkv[:, 2 * INNER:3 * INNER].reshape(bsz, N_PAD, INNER)

        # Merge (head, batch) into one leading batch axis -> a single batched
        # score contraction, ONE softmax for all heads, one attn@v.
        qz = jnp.concatenate(
            [q3[..., hh * DIM_HEAD:(hh + 1) * DIM_HEAD] for hh in range(HEADS)], axis=0)
        kz = jnp.concatenate(
            [k3[..., hh * DIM_HEAD:(hh + 1) * DIM_HEAD] for hh in range(HEADS)], axis=0)
        vz = jnp.concatenate(
            [v3[..., hh * DIM_HEAD:(hh + 1) * DIM_HEAD] for hh in range(HEADS)], axis=0)
        # (HEADS*bsz, N_PAD, DIM_HEAD)

        s = jnp.einsum("znd,zmd->znm", qz, kz,
                       preferred_element_type=jnp.float32) * SCALE
        s = jnp.where(key_valid, s, neg_big)
        m = jnp.max(s, axis=-1, keepdims=True)
        e = jnp.exp(s - m)
        a = e * pl.reciprocal(jnp.sum(e, axis=-1, keepdims=True), approx=True)
        oz = jnp.einsum("znm,zmd->znd", a, vz,
                        preferred_element_type=jnp.float32)   # (Z, N_PAD, DIM_HEAD)

        # Back to (bn, INNER): heads return to contiguous lane groups.
        attn_out = jnp.concatenate(
            [oz[hh * bsz:(hh + 1) * bsz] for hh in range(HEADS)], axis=-1
        ).reshape(bn, INNER)

        x = x + (
            jnp.dot(attn_out, wo_ref[l], preferred_element_type=jnp.float32)
            + misc_ref[base + 1:base + 2, 0:DIM]              # to_out bias
        )

        # ---------- PreNorm(FeedForward) + residual ----------
        h2 = _norm(x)
        ff = _gelu(
            jnp.dot(h2, w1_ref[l], preferred_element_type=jnp.float32)
            + misc_ref[base + 2:base + 3, 0:MLP_DIM]          # folded LN beta + b1
        )
        x = x + (
            jnp.dot(ff, w2_ref[l], preferred_element_type=jnp.float32)
            + misc_ref[base + 3:base + 4, 0:DIM]              # b2
        )

    # ---------- cls pooling + (folded) LayerNorm + Linear head ----------
    pooled = x.reshape(bsz, N_PAD, DIM)[:, 0:1, :].reshape(bsz, DIM)
    hp = _norm(pooled)
    o_ref[...] = (
        jnp.dot(hp, head_w_ref[...], preferred_element_type=jnp.float32)
        + misc_ref[N_PAD:N_PAD + 1, :]                        # folded head bias (128)
    )


def _pinned(shape):
    nd = len(shape)
    return pl.BlockSpec(tuple(shape), lambda i, _nd=nd: (0,) * _nd)


# ---------------- full forward pass ----------------
def vit_forward(img, params):
    B = img.shape[0]
    g = IMAGE_SIZE // PATCH_SIZE

    # Rearrange 'b c (h p1) (w p2) -> b (h w) (p1 p2 c)' — pure layout glue.
    x = img.reshape(B, CHANNELS, g, PATCH_SIZE, g, PATCH_SIZE)
    x = x.transpose(0, 2, 4, 3, 5, 1).reshape(B, NUM_PATCHES, PATCH_DIM)

    # Pad each batch's sequence to N_PAD rows: row 0 = cls slot (zeros),
    # rows 1..NUM_PATCHES = patches, remaining rows = zero padding.
    patches = jnp.concatenate(
        [
            jnp.zeros((B, 1, PATCH_DIM), jnp.float32),
            x,
            jnp.zeros((B, N_PAD - SEQ, PATCH_DIM), jnp.float32),
        ],
        axis=1,
    )

    # ---- batch grid tiling (128/256 token rows per step when batch allows) ----
    if B >= 32:
        B_TILE = 32          # 256 token rows: fills the 256-wide MXU on v6e/v7x
    elif B >= 16:
        B_TILE = 16          # 128 token rows: matches v5e's 128-wide MXU
    else:
        B_TILE = B           # tiny batch: single grid step
    n_bt = -(-B // B_TILE)
    B_pad = n_bt * B_TILE
    if B_pad > B:
        patches = jnp.concatenate(
            [patches, jnp.zeros((B_pad - B, N_PAD, PATCH_DIM), jnp.float32)], axis=0)
    patches = patches.reshape(B_pad * N_PAD, PATCH_DIM)

    # ---- offline parameter folding / packing (tiny one-off XLA ops) ----
    pos = params["pos_embedding"][0]                          # (SEQ, DIM)
    row_cls = (params["cls_token"][0, 0] + pos[0])[None, :]   # (1, DIM)
    row_pat = params["pe_b"] + pos[1:SEQ]                     # (NUM_PATCHES, DIM)
    row_pad = jnp.zeros((N_PAD - SEQ, DIM), jnp.float32)
    token_add = jnp.concatenate([row_cls, row_pat, row_pad], axis=0)  # (N_PAD, DIM)

    L = params["layers"]
    g1 = L["ln1_g"][:, 0, :]
    b1n = L["ln1_b"][:, 0, :]
    g2 = L["ln2_g"][:, 0, :]
    b2n = L["ln2_b"][:, 0, :]
    wqkv_f = L["wqkv"] * g1[:, :, None]                               # (D, DIM, 3I)
    qkv_b = jnp.einsum("ld,lde->le", b1n, L["wqkv"])                  # (D, 3I)
    w1_f = L["w1"] * g2[:, :, None]                                   # (D, DIM, MLP)
    b1_f = L["b1"][:, 0, :] + jnp.einsum("ld,lde->le", b2n, L["w1"])  # (D, MLP)
    bo_v = L["bo"][:, 0, :]                                           # (D, DIM)
    b2_v = L["b2"][:, 0, :]                                           # (D, DIM)

    hg = params["head_g"][0]
    hb = params["head_b"][0]
    hw_f = params["head_w"] * hg[:, None]                             # (DIM, NC)
    hb_f = params["head_bias"][0] + hb @ params["head_w"]             # (NC,)
    head_w_pad = jnp.zeros((DIM, CLS_PAD), jnp.float32).at[:, :NUM_CLASSES].set(hw_f)

    def _pad128(v):
        v = jnp.asarray(v, jnp.float32).reshape(-1)
        return jnp.zeros((CLS_PAD,), jnp.float32).at[: v.shape[0]].set(v)

    misc_rows = [jnp.pad(token_add, ((0, 0), (0, CLS_PAD - DIM)))]    # rows 0..7
    misc_rows.append(_pad128(hb_f)[None])                             # row 8
    for l in range(DEPTH):
        misc_rows.append(_pad128(qkv_b[l])[None])
        misc_rows.append(_pad128(bo_v[l])[None])
        misc_rows.append(_pad128(b1_f[l])[None])
        misc_rows.append(_pad128(b2_v[l])[None])
    misc = jnp.concatenate(misc_rows, axis=0)                         # (17, 128)

    args = (patches, params["pe_w"], wqkv_f, L["wo"], w1_f, L["w2"],
            head_w_pad, misc)

    in_specs = [
        pl.BlockSpec((B_TILE * N_PAD, PATCH_DIM), lambda i: (i, 0)),  # streamed
        _pinned(params["pe_w"].shape),
        _pinned(wqkv_f.shape),
        _pinned(L["wo"].shape),
        _pinned(w1_f.shape),
        _pinned(L["w2"].shape),
        _pinned(head_w_pad.shape),
        _pinned(misc.shape),
    ]

    out_pad = pl.pallas_call(
        _vit_kernel,
        out_shape=jax.ShapeDtypeStruct((B_pad, CLS_PAD), jnp.float32),
        grid=(n_bt,),
        in_specs=in_specs,
        out_specs=pl.BlockSpec((B_TILE, CLS_PAD), lambda i: (i, 0)),
        compiler_params=pltpu.CompilerParams(
            dimension_semantics=("parallel",)                  # 2nd TC on v7x
        ),
    )(*args)

    return out_pad[:B, :NUM_CLASSES]


# ---------------- deterministic parameter init ----------------
def init_params(key):
    ks = iter(jax.random.split(key, 32))

    def randn(shape, scale=1.0):
        return scale * jax.random.normal(next(ks), shape, jnp.float32)

    layers = {
        "ln1_g": jnp.ones((DEPTH, 1, DIM), jnp.float32),
        "ln1_b": jnp.zeros((DEPTH, 1, DIM), jnp.float32),
        "wqkv": randn((DEPTH, DIM, 3 * INNER), 0.02),   # to_qkv (bias=False)
        "wo": randn((DEPTH, INNER, DIM), 0.02),         # to_out Linear
        "bo": jnp.zeros((DEPTH, 1, DIM), jnp.float32),
        "ln2_g": jnp.ones((DEPTH, 1, DIM), jnp.float32),
        "ln2_b": jnp.zeros((DEPTH, 1, DIM), jnp.float32),
        "w1": randn((DEPTH, DIM, MLP_DIM), 0.02),
        "b1": jnp.zeros((DEPTH, 1, MLP_DIM), jnp.float32),
        "w2": randn((DEPTH, MLP_DIM, DIM), 0.02),
        "b2": jnp.zeros((DEPTH, 1, DIM), jnp.float32),
    }
    return {
        "pe_w": randn((PATCH_DIM, DIM), 0.02),
        "pe_b": jnp.zeros((1, DIM), jnp.float32),
        "pos_embedding": randn((1, SEQ, DIM)),
        "cls_token": randn((1, 1, DIM)),
        "head_g": jnp.ones((1, DIM), jnp.float32),
        "head_b": jnp.zeros((1, DIM), jnp.float32),
        "head_w": randn((DIM, NUM_CLASSES), 0.02),
        "head_bias": jnp.zeros((1, NUM_CLASSES), jnp.float32),
        "layers": layers,
    }


if __name__ == "__main__":
    key = jax.random.PRNGKey(0)
    pkey, xkey = jax.random.split(key)
    params = init_params(pkey)
    img = jax.random.normal(
        xkey, (2, CHANNELS, IMAGE_SIZE, IMAGE_SIZE), jnp.float32
    )  # NCHW, like PyTorch
    logits = jax.jit(vit_forward)(img, params)
    jax.block_until_ready(logits)
    assert logits.shape == (2, NUM_CLASSES)
    print("KERNEL_OK")
</pallas_src>

<mosaic_0001>
module attributes {stable_mosaic.version = 11 : i64} {
  func.func @_vit_kernel(%arg0: i32, %arg1: memref<16x256xf32, #tpu.memory_space<vmem>>, %arg2: memref<256x32xf32, #tpu.memory_space<vmem>>, %arg3: memref<2x32x96xf32, #tpu.memory_space<vmem>>, %arg4: memref<2x32x32xf32, #tpu.memory_space<vmem>>, %arg5: memref<2x32x64xf32, #tpu.memory_space<vmem>>, %arg6: memref<2x64x32xf32, #tpu.memory_space<vmem>>, %arg7: memref<32x128xf32, #tpu.memory_space<vmem>>, %arg8: memref<17x128xf32, #tpu.memory_space<vmem>>, %arg9: memref<2x128xf32, #tpu.memory_space<vmem>>) attributes {dimension_semantics = [#tpu.dimension_semantics<parallel>], iteration_bounds = array<i64: 1>, scalar_prefetch = 0 : i64, scratch_operands = 0 : i64, tpu.core_type = #tpu.core_type<tc>, window_params = [{transform_indices = @transform_0, window_bounds = array<i64: 16, 256>}, {pipeline_mode = #tpu.pipeline_mode<synchronous>, transform_indices = @transform_1, window_bounds = array<i64: 256, 32>}, {pipeline_mode = #tpu.pipeline_mode<synchronous>, transform_indices = @transform_2, window_bounds = array<i64: 2, 32, 96>}, {pipeline_mode = #tpu.pipeline_mode<synchronous>, transform_indices = @transform_3, window_bounds = array<i64: 2, 32, 32>}, {pipeline_mode = #tpu.pipeline_mode<synchronous>, transform_indices = @transform_4, window_bounds = array<i64: 2, 32, 64>}, {pipeline_mode = #tpu.pipeline_mode<synchronous>, transform_indices = @transform_5, window_bounds = array<i64: 2, 64, 32>}, {pipeline_mode = #tpu.pipeline_mode<synchronous>, transform_indices = @transform_6, window_bounds = array<i64: 32, 128>}, {pipeline_mode = #tpu.pipeline_mode<synchronous>, transform_indices = @transform_7, window_bounds = array<i64: 17, 128>}, {transform_indices = @transform_8, window_bounds = array<i64: 2, 128>}]} {
    %c0 = arith.constant 0 : index
    %c0_0 = arith.constant 0 : index
    %0 = vector.load %arg1[%c0, %c0_0] : memref<16x256xf32, #tpu.memory_space<vmem>>, vector<16x256xf32>
    %c0_1 = arith.constant 0 : index
    %c0_2 = arith.constant 0 : index
    %1 = vector.load %arg2[%c0_1, %c0_2] : memref<256x32xf32, #tpu.memory_space<vmem>>, vector<256x32xf32>
    %cst = arith.constant dense<0.000000e+00> : vector<16x32xf32>
    %2 = tpu.matmul %0, %1, %cst {dimension_numbers = #tpu.dot_dimension_numbers<[1], [0], [0], [1], [0, 0, 1, 1], [], []>} : vector<16x256xf32>, vector<256x32xf32>, vector<16x32xf32> -> vector<16x32xf32>
    %c0_3 = arith.constant 0 : index
    %c0_4 = arith.constant 0 : index
    %3 = vector.load %arg8[%c0_3, %c0_4] : memref<17x128xf32, #tpu.memory_space<vmem>>, vector<8x32xf32>
    %4 = vector.shape_cast %2 : vector<16x32xf32> to vector<2x8x32xf32>
    %5 = vector.shape_cast %3 : vector<8x32xf32> to vector<1x8x32xf32>
    %6 = vector.broadcast %5 : vector<1x8x32xf32> to vector<2x8x32xf32>
    %7 = arith.addf %4, %6 : vector<2x8x32xf32>
    %8 = vector.shape_cast %7 : vector<2x8x32xf32> to vector<16x32xf32>
    %9 = tpu.iota {dimensions = array<i32: 2>} : vector<8x8x8xi32>
    %c5_i32 = arith.constant 5 : i32
    %10 = vector.broadcast %c5_i32 : i32 to vector<8x8x8xi32>
    %11 = arith.cmpi slt, %9, %10 : vector<8x8x8xi32>
    %cst_5 = arith.constant dense<0.000000e+00> : vector<16xf32>
    %12 = vector.multi_reduction <add>, %8, %cst_5 [1] : vector<16x32xf32> to vector<16xf32>
    %13 = vector.shape_cast %12 : vector<16xf32> to vector<16x1xf32>
    %cst_6 = arith.constant 3.200000e+01 : f32
    %14 = vector.broadcast %cst_6 : f32 to vector<16x1xf32>
    %15 = arith.divf %13, %14 : vector<16x1xf32>
    %16 = vector.broadcast %15 : vector<16x1xf32> to vector<16x32xf32>
    %17 = arith.subf %8, %16 : vector<16x32xf32>
    %18 = arith.mulf %17, %17 : vector<16x32xf32>
    %cst_7 = arith.constant dense<0.000000e+00> : vector<16xf32>
    %19 = vector.multi_reduction <add>, %18, %cst_7 [1] : vector<16x32xf32> to vector<16xf32>
    %20 = vector.shape_cast %19 : vector<16xf32> to vector<16x1xf32>
    %cst_8 = arith.constant 3.200000e+01 : f32
    %21 = vector.broadcast %cst_8 : f32 to vector<16x1xf32>
    %22 = arith.divf %20, %21 : vector<16x1xf32>
    %23 = vector.broadcast %15 : vector<16x1xf32> to vector<16x32xf32>
    %24 = arith.subf %8, %23 : vector<16x32xf32>
    %cst_9 = arith.constant 9.99999974E-6 : f32
    %25 = vector.broadcast %cst_9 : f32 to vector<16x1xf32>
    %26 = arith.addf %22, %25 : vector<16x1xf32>
    %27 = math.rsqrt %26 : vector<16x1xf32>
    %28 = vector.broadcast %27 : vector<16x1xf32> to vector<16x32xf32>
    %29 = arith.mulf %24, %28 : vector<16x32xf32>
    %c0_10 = arith.constant 0 : index
    %c0_11 = arith.constant 0 : index
    %c0_12 = arith.constant 0 : index
    %30 = vector.load %arg3[%c0_10, %c0_11, %c0_12] : memref<2x32x96xf32, #tpu.memory_space<vmem>>, vector<1x32x96xf32>
    %31 = vector.shape_cast %30 : vector<1x32x96xf32> to vector<32x96xf32>
    %cst_13 = arith.constant dense<0.000000e+00> : vector<16x96xf32>
    %32 = tpu.matmul %29, %31, %cst_13 {dimension_numbers = #tpu.dot_dimension_numbers<[1], [0], [0], [1], [0, 0, 1, 1], [], []>} : vector<16x32xf32>, vector<32x96xf32>, vector<16x96xf32> -> vector<16x96xf32>
    %c9 = arith.constant 9 : index
    %c0_14 = arith.constant 0 : index
    %33 = vector.load %arg8[%c9, %c0_14] : memref<17x128xf32, #tpu.memory_space<vmem>>, vector<1x96xf32>
    %34 = vector.broadcast %33 : vector<1x96xf32> to vector<16x96xf32>
    %35 = arith.addf %32, %34 : vector<16x96xf32>
    %36 = vector.extract_strided_slice %35 {offsets = [0, 0], sizes = [16, 32], strides = [1, 1]} : vector<16x96xf32> to vector<16x32xf32>
    %37 = vector.shape_cast %36 : vector<16x32xf32> to vector<2x8x32xf32>
    %38 = vector.extract_strided_slice %35 {offsets = [0, 32], sizes = [16, 32], strides = [1, 1]} : vector<16x96xf32> to vector<16x32xf32>
    %39 = vector.shape_cast %38 : vector<16x32xf32> to vector<2x8x32xf32>
    %40 = vector.extract_strided_slice %35 {offsets = [0, 64], sizes = [16, 32], strides = [1, 1]} : vector<16x96xf32> to vector<16x32xf32>
    %41 = vector.shape_cast %40 : vector<16x32xf32> to vector<2x8x32xf32>
    %42 = vector.extract_strided_slice %37 {offsets = [0, 0, 0], sizes = [2, 8, 8], strides = [1, 1, 1]} : vector<2x8x32xf32> to vector<2x8x8xf32>
    %43 = vector.extract_strided_slice %37 {offsets = [0, 0, 8], sizes = [2, 8, 8], strides = [1, 1, 1]} : vector<2x8x32xf32> to vector<2x8x8xf32>
    %44 = vector.extract_strided_slice %37 {offsets = [0, 0, 16], sizes = [2, 8, 8], strides = [1, 1, 1]} : vector<2x8x32xf32> to vector<2x8x8xf32>
    %45 = vector.extract_strided_slice %37 {offsets = [0, 0, 24], sizes = [2, 8, 8], strides = [1, 1, 1]} : vector<2x8x32xf32> to vector<2x8x8xf32>
    %46 = tpu.concatenate %42, %43, %44, %45 in 0 : vector<2x8x8xf32>, vector<2x8x8xf32>, vector<2x8x8xf32>, vector<2x8x8xf32> -> vector<8x8x8xf32>
    %47 = vector.extract_strided_slice %39 {offsets = [0, 0, 0], sizes = [2, 8, 8], strides = [1, 1, 1]} : vector<2x8x32xf32> to vector<2x8x8xf32>
    %48 = vector.extract_strided_slice %39 {offsets = [0, 0, 8], sizes = [2, 8, 8], strides = [1, 1, 1]} : vector<2x8x32xf32> to vector<2x8x8xf32>
    %49 = vector.extract_strided_slice %39 {offsets = [0, 0, 16], sizes = [2, 8, 8], strides = [1, 1, 1]} : vector<2x8x32xf32> to vector<2x8x8xf32>
    %50 = vector.extract_strided_slice %39 {offsets = [0, 0, 24], sizes = [2, 8, 8], strides = [1, 1, 1]} : vector<2x8x32xf32> to vector<2x8x8xf32>
    %51 = tpu.concatenate %47, %48, %49, %50 in 0 : vector<2x8x8xf32>, vector<2x8x8xf32>, vector<2x8x8xf32>, vector<2x8x8xf32> -> vector<8x8x8xf32>
    %52 = vector.extract_strided_slice %41 {offsets = [0, 0, 0], sizes = [2, 8, 8], strides = [1, 1, 1]} : vector<2x8x32xf32> to vector<2x8x8xf32>
    %53 = vector.extract_strided_slice %41 {offsets = [0, 0, 8], sizes = [2, 8, 8], strides = [1, 1, 1]} : vector<2x8x32xf32> to vector<2x8x8xf32>
    %54 = vector.extract_strided_slice %41 {offsets = [0, 0, 16], sizes = [2, 8, 8], strides = [1, 1, 1]} : vector<2x8x32xf32> to vector<2x8x8xf32>
    %55 = vector.extract_strided_slice %41 {offsets = [0, 0, 24], sizes = [2, 8, 8], strides = [1, 1, 1]} : vector<2x8x32xf32> to vector<2x8x8xf32>
    %56 = tpu.concatenate %52, %53, %54, %55 in 0 : vector<2x8x8xf32>, vector<2x8x8xf32>, vector<2x8x8xf32>, vector<2x8x8xf32> -> vector<8x8x8xf32>
    "tpu.trace_start"() <{level = 10 : i32, message = "znd,zmd->znm"}> : () -> ()
    %cst_15 = arith.constant dense<0.000000e+00> : vector<8x8x8xf32>
    %57 = tpu.matmul %46, %51, %cst_15 {dimension_numbers = #tpu.dot_dimension_numbers<[2], [2], [1], [1], [0, 0, 0, 1, 1, 1], [0], [0]>} : vector<8x8x8xf32>, vector<8x8x8xf32>, vector<8x8x8xf32> -> vector<8x8x8xf32>
    "tpu.trace_stop"() : () -> ()
    %cst_16 = arith.constant 0.353553385 : f32
    %58 = vector.broadcast %cst_16 : f32 to vector<8x8x8xf32>
    %59 = arith.mulf %57, %58 : vector<8x8x8xf32>
    %cst_17 = arith.constant -1.000000e+30 : f32
    %60 = vector.broadcast %cst_17 : f32 to vector<8x8x8xf32>
    %61 = arith.select %11, %59, %60 : vector<8x8x8xi1>, vector<8x8x8xf32>
    %cst_18 = arith.constant dense<0xFF800000> : vector<8x8xf32>
    %62 = vector.multi_reduction <maximumf>, %61, %cst_18 [2] : vector<8x8x8xf32> to vector<8x8xf32>
    %63 = vector.shape_cast %62 : vector<8x8xf32> to vector<8x8x1xf32>
    %64 = vector.broadcast %63 : vector<8x8x1xf32> to vector<8x8x8xf32>
    %65 = arith.subf %61, %64 : vector<8x8x8xf32>
    %66 = math.exp %65 : vector<8x8x8xf32>
    %cst_19 = arith.constant dense<0.000000e+00> : vector<8x8xf32>
    %67 = vector.multi_reduction <add>, %66, %cst_19 [2] : vector<8x8x8xf32> to vector<8x8xf32>
    %68 = vector.shape_cast %67 : vector<8x8xf32> to vector<8x8x1xf32>
    %69 = tpu.reciprocal %68 {approx = true} : vector<8x8x1xf32> -> vector<8x8x1xf32>
    %70 = vector.broadcast %69 : vector<8x8x1xf32> to vector<8x8x8xf32>
    %71 = arith.mulf %66, %70 : vector<8x8x8xf32>
    "tpu.trace_start"() <{level = 10 : i32, message = "znm,zmd->znd"}> : () -> ()
    %cst_20 = arith.constant dense<0.000000e+00> : vector<8x8x8xf32>
    %72 = tpu.matmul %71, %56, %cst_20 {dimension_numbers = #tpu.dot_dimension_numbers<[2], [1], [1], [2], [0, 0, 0, 1, 1, 2], [0], [0]>} : vector<8x8x8xf32>, vector<8x8x8xf32>, vector<8x8x8xf32> -> vector<8x8x8xf32>
    "tpu.trace_stop"() : () -> ()
    %73 = vector.extract_strided_slice %72 {offsets = [0, 0, 0], sizes = [2, 8, 8], strides = [1, 1, 1]} : vector<8x8x8xf32> to vector<2x8x8xf32>
    %74 = vector.extract_strided_slice %72 {offsets = [2, 0, 0], sizes = [2, 8, 8], strides = [1, 1, 1]} : vector<8x8x8xf32> to vector<2x8x8xf32>
    %75 = vector.extract_strided_slice %72 {offsets = [4, 0, 0], sizes = [2, 8, 8], strides = [1, 1, 1]} : vector<8x8x8xf32> to vector<2x8x8xf32>
    %76 = vector.extract_strided_slice %72 {offsets = [6, 0, 0], sizes = [2, 8, 8], strides = [1, 1, 1]} : vector<8x8x8xf32> to vector<2x8x8xf32>
    %77 = tpu.concatenate %73, %74, %75, %76 in 2 : vector<2x8x8xf32>, vector<2x8x8xf32>, vector<2x8x8xf32>, vector<2x8x8xf32> -> vector<2x8x32xf32>
    %78 = vector.shape_cast %77 : vector<2x8x32xf32> to vector<16x32xf32>
    %c0_21 = arith.constant 0 : index
    %c0_22 = arith.constant 0 : index
    %c0_23 = arith.constant 0 : index
    %79 = vector.load %arg4[%c0_21, %c0_22, %c0_23] : memref<2x32x32xf32, #tpu.memory_space<vmem>>, vector<1x32x32xf32>
    %80 = vector.shape_cast %79 : vector<1x32x32xf32> to vector<32x32xf32>
    %cst_24 = arith.constant dense<0.000000e+00> : vector<16x32xf32>
    %81 = tpu.matmul %78, %80, %cst_24 {dimension_numbers = #tpu.dot_dimension_numbers<[1], [0], [0], [1], [0, 0, 1, 1], [], []>} : vector<16x32xf32>, vector<32x32xf32>, vector<16x32xf32> -> vector<16x32xf32>
    %c10 = arith.constant 10 : index
    %c0_25 = arith.constant 0 : index
    %82 = vector.load %arg8[%c10, %c0_25] : memref<17x128xf32, #tpu.memory_space<vmem>>, vector<1x32xf32>
    %83 = vector.broadcast %82 : vector<1x32xf32> to vector<16x32xf32>
    %84 = arith.addf %81, %83 : vector<16x32xf32>
    %85 = arith.addf %8, %84 : vector<16x32xf32>
    %cst_26 = arith.constant dense<0.000000e+00> : vector<16xf32>
    %86 = vector.multi_reduction <add>, %85, %cst_26 [1] : vector<16x32xf32> to vector<16xf32>
    %87 = vector.shape_cast %86 : vector<16xf32> to vector<16x1xf32>
    %cst_27 = arith.constant 3.200000e+01 : f32
    %88 = vector.broadcast %cst_27 : f32 to vector<16x1xf32>
    %89 = arith.divf %87, %88 : vector<16x1xf32>
    %90 = vector.broadcast %89 : vector<16x1xf32> to vector<16x32xf32>
    %91 = arith.subf %85, %90 : vector<16x32xf32>
    %92 = arith.mulf %91, %91 : vector<16x32xf32>
    %cst_28 = arith.constant dense<0.000000e+00> : vector<16xf32>
    %93 = vector.multi_reduction <add>, %92, %cst_28 [1] : vector<16x32xf32> to vector<16xf32>
    %94 = vector.shape_cast %93 : vector<16xf32> to vector<16x1xf32>
    %cst_29 = arith.constant 3.200000e+01 : f32
    %95 = vector.broadcast %cst_29 : f32 to vector<16x1xf32>
    %96 = arith.divf %94, %95 : vector<16x1xf32>
    %97 = vector.broadcast %89 : vector<16x1xf32> to vector<16x32xf32>
    %98 = arith.subf %85, %97 : vector<16x32xf32>
    %cst_30 = arith.constant 9.99999974E-6 : f32
    %99 = vector.broadcast %cst_30 : f32 to vector<16x1xf32>
    %100 = arith.addf %96, %99 : vector<16x1xf32>
    %101 = math.rsqrt %100 : vector<16x1xf32>
    %102 = vector.broadcast %101 : vector<16x1xf32> to vector<16x32xf32>
    %103 = arith.mulf %98, %102 : vector<16x32xf32>
    %c0_31 = arith.constant 0 : index
    %c0_32 = arith.constant 0 : index
    %c0_33 = arith.constant 0 : index
    %104 = vector.load %arg5[%c0_31, %c0_32, %c0_33] : memref<2x32x64xf32, #tpu.memory_space<vmem>>, vector<1x32x64xf32>
    %105 = vector.shape_cast %104 : vector<1x32x64xf32> to vector<32x64xf32>
    %cst_34 = arith.constant dense<0.000000e+00> : vector<16x64xf32>
    %106 = tpu.matmul %103, %105, %cst_34 {dimension_numbers = #tpu.dot_dimension_numbers<[1], [0], [0], [1], [0, 0, 1, 1], [], []>} : vector<16x32xf32>, vector<32x64xf32>, vector<16x64xf32> -> vector<16x64xf32>
    %c11 = arith.constant 11 : index
    %c0_35 = arith.constant 0 : index
    %107 = vector.load %arg8[%c11, %c0_35] : memref<17x128xf32, #tpu.memory_space<vmem>>, vector<1x64xf32>
    %108 = vector.broadcast %107 : vector<1x64xf32> to vector<16x64xf32>
    %109 = arith.addf %106, %108 : vector<16x64xf32>
    %cst_36 = arith.constant 5.000000e-01 : f32
    %110 = vector.broadcast %cst_36 : f32 to vector<16x64xf32>
    %111 = arith.mulf %110, %109 : vector<16x64xf32>
    %cst_37 = arith.constant 0.707106769 : f32
    %112 = vector.broadcast %cst_37 : f32 to vector<16x64xf32>
    %113 = arith.mulf %109, %112 : vector<16x64xf32>
    %114 = math.absf %113 : vector<16x64xf32>
    %cst_38 = arith.constant 5.000000e-01 : f32
    %115 = vector.broadcast %cst_38 : f32 to vector<16x64xf32>
    %116 = arith.mulf %115, %114 : vector<16x64xf32>
    %cst_39 = arith.constant 1.000000e+00 : f32
    %117 = vector.broadcast %cst_39 : f32 to vector<16x64xf32>
    %118 = arith.addf %117, %116 : vector<16x64xf32>
    %119 = tpu.reciprocal %118 {approx = true} : vector<16x64xf32> -> vector<16x64xf32>
    %cst_40 = arith.constant 0.000000e+00 : f32
    %120 = vector.broadcast %cst_40 : f32 to vector<16x64xf32>
    %121 = arith.subf %120, %114 : vector<16x64xf32>
    %122 = arith.mulf %121, %114 : vector<16x64xf32>
    %cst_41 = arith.constant 1.26551223 : f32
    %123 = vector.broadcast %cst_41 : f32 to vector<16x64xf32>
    %124 = arith.subf %122, %123 : vector<16x64xf32>
    %cst_42 = arith.constant 0.170872763 : f32
    %125 = vector.broadcast %cst_42 : f32 to vector<16x64xf32>
    %126 = arith.mulf %119, %125 : vector<16x64xf32>
    %cst_43 = arith.constant -0.822152256 : f32
    %127 = vector.broadcast %cst_43 : f32 to vector<16x64xf32>
    %128 = arith.addf %127, %126 : vector<16x64xf32>
    %129 = arith.mulf %119, %128 : vector<16x64xf32>
    %cst_44 = arith.constant 1.48851585 : f32
    %130 = vector.broadcast %cst_44 : f32 to vector<16x64xf32>
    %131 = arith.addf %130, %129 : vector<16x64xf32>
    %132 = arith.mulf %119, %131 : vector<16x64xf32>
    %cst_45 = arith.constant -1.13520396 : f32
    %133 = vector.broadcast %cst_45 : f32 to vector<16x64xf32>
    %134 = arith.addf %133, %132 : vector<16x64xf32>
    %135 = arith.mulf %119, %134 : vector<16x64xf32>
    %cst_46 = arith.constant 0.278868079 : f32
    %136 = vector.broadcast %cst_46 : f32 to vector<16x64xf32>
    %137 = arith.addf %136, %135 : vector<16x64xf32>
    %138 = arith.mulf %119, %137 : vector<16x64xf32>
    %cst_47 = arith.constant -0.186288059 : f32
    %139 = vector.broadcast %cst_47 : f32 to vector<16x64xf32>
    %140 = arith.addf %139, %138 : vector<16x64xf32>
    %141 = arith.mulf %119, %140 : vector<16x64xf32>
    %cst_48 = arith.constant 0.0967841818 : f32
    %142 = vector.broadcast %cst_48 : f32 to vector<16x64xf32>
    %143 = arith.addf %142, %141 : vector<16x64xf32>
    %144 = arith.mulf %119, %143 : vector<16x64xf32>
    %cst_49 = arith.constant 0.374091953 : f32
    %145 = vector.broadcast %cst_49 : f32 to vector<16x64xf32>
    %146 = arith.addf %145, %144 : vector<16x64xf32>
    %147 = arith.mulf %119, %146 : vector<16x64xf32>
    %cst_50 = arith.constant 1.00002372 : f32
    %148 = vector.broadcast %cst_50 : f32 to vector<16x64xf32>
    %149 = arith.addf %148, %147 : vector<16x64xf32>
    %150 = arith.mulf %119, %149 : vector<16x64xf32>
    %151 = arith.addf %124, %150 : vector<16x64xf32>
    %152 = math.exp %151 : vector<16x64xf32>
    %153 = arith.mulf %119, %152 : vector<16x64xf32>
    %cst_51 = arith.constant 0.000000e+00 : f32
    %154 = vector.broadcast %cst_51 : f32 to vector<16x64xf32>
    %155 = arith.cmpf oge, %113, %154 : vector<16x64xf32>
    %cst_52 = arith.constant 2.000000e+00 : f32
    %156 = vector.broadcast %cst_52 : f32 to vector<16x64xf32>
    %157 = arith.subf %156, %153 : vector<16x64xf32>
    %158 = arith.select %155, %153, %157 : vector<16x64xi1>, vector<16x64xf32>
    %cst_53 = arith.constant 1.000000e+00 : f32
    %159 = vector.broadcast %cst_53 : f32 to vector<16x64xf32>
    %160 = arith.subf %159, %158 : vector<16x64xf32>
    %cst_54 = arith.constant 1.000000e+00 : f32
    %161 = vector.broadcast %cst_54 : f32 to vector<16x64xf32>
    %162 = arith.addf %161, %160 : vector<16x64xf32>
    %163 = arith.mulf %111, %162 : vector<16x64xf32>
    %c0_55 = arith.constant 0 : index
    %c0_56 = arith.constant 0 : index
    %c0_57 = arith.constant 0 : index
    %164 = vector.load %arg6[%c0_55, %c0_56, %c0_57] : memref<2x64x32xf32, #tpu.memory_space<vmem>>, vector<1x64x32xf32>
    %165 = vector.shape_cast %164 : vector<1x64x32xf32> to vector<64x32xf32>
    %cst_58 = arith.constant dense<0.000000e+00> : vector<16x32xf32>
    %166 = tpu.matmul %163, %165, %cst_58 {dimension_numbers = #tpu.dot_dimension_numbers<[1], [0], [0], [1], [0, 0, 1, 1], [], []>} : vector<16x64xf32>, vector<64x32xf32>, vector<16x32xf32> -> vector<16x32xf32>
    %c12 = arith.constant 12 : index
    %c0_59 = arith.constant 0 : index
    %167 = vector.load %arg8[%c12, %c0_59] : memref<17x128xf32, #tpu.memory_space<vmem>>, vector<1x32xf32>
    %168 = vector.broadcast %167 : vector<1x32xf32> to vector<16x32xf32>
    %169 = arith.addf %166, %168 : vector<16x32xf32>
    %170 = arith.addf %85, %169 : vector<16x32xf32>
    %cst_60 = arith.constant dense<0.000000e+00> : vector<16xf32>
    %171 = vector.multi_reduction <add>, %170, %cst_60 [1] : vector<16x32xf32> to vector<16xf32>
    %172 = vector.shape_cast %171 : vector<16xf32> to vector<16x1xf32>
    %cst_61 = arith.constant 3.200000e+01 : f32
    %173 = vector.broadcast %cst_61 : f32 to vector<16x1xf32>
    %174 = arith.divf %172, %173 : vector<16x1xf32>
    %175 = vector.broadcast %174 : vector<16x1xf32> to vector<16x32xf32>
    %176 = arith.subf %170, %175 : vector<16x32xf32>
    %177 = arith.mulf %176, %176 : vector<16x32xf32>
    %cst_62 = arith.constant dense<0.000000e+00> : vector<16xf32>
    %178 = vector.multi_reduction <add>, %177, %cst_62 [1] : vector<16x32xf32> to vector<16xf32>
    %179 = vector.shape_cast %178 : vector<16xf32> to vector<16x1xf32>
    %cst_63 = arith.constant 3.200000e+01 : f32
    %180 = vector.broadcast %cst_63 : f32 to vector<16x1xf32>
    %181 = arith.divf %179, %180 : vector<16x1xf32>
    %182 = vector.broadcast %174 : vector<16x1xf32> to vector<16x32xf32>
    %183 = arith.subf %170, %182 : vector<16x32xf32>
    %cst_64 = arith.constant 9.99999974E-6 : f32
    %184 = vector.broadcast %cst_64 : f32 to vector<16x1xf32>
    %185 = arith.addf %181, %184 : vector<16x1xf32>
    %186 = math.rsqrt %185 : vector<16x1xf32>
    %187 = vector.broadcast %186 : vector<16x1xf32> to vector<16x32xf32>
    %188 = arith.mulf %183, %187 : vector<16x32xf32>
    %c1 = arith.constant 1 : index
    %c0_65 = arith.constant 0 : index
    %c0_66 = arith.constant 0 : index
    %189 = vector.load %arg3[%c1, %c0_65, %c0_66] : memref<2x32x96xf32, #tpu.memory_space<vmem>>, vector<1x32x96xf32>
    %190 = vector.shape_cast %189 : vector<1x32x96xf32> to vector<32x96xf32>
    %cst_67 = arith.constant dense<0.000000e+00> : vector<16x96xf32>
    %191 = tpu.matmul %188, %190, %cst_67 {dimension_numbers = #tpu.dot_dimension_numbers<[1], [0], [0], [1], [0, 0, 1, 1], [], []>} : vector<16x32xf32>, vector<32x96xf32>, vector<16x96xf32> -> vector<16x96xf32>
    %c13 = arith.constant 13 : index
    %c0_68 = arith.constant 0 : index
    %192 = vector.load %arg8[%c13, %c0_68] : memref<17x128xf32, #tpu.memory_space<vmem>>, vector<1x96xf32>
    %193 = vector.broadcast %192 : vector<1x96xf32> to vector<16x96xf32>
    %194 = arith.addf %191, %193 : vector<16x96xf32>
    %195 = vector.extract_strided_slice %194 {offsets = [0, 0], sizes = [16, 32], strides = [1, 1]} : vector<16x96xf32> to vector<16x32xf32>
    %196 = vector.shape_cast %195 : vector<16x32xf32> to vector<2x8x32xf32>
    %197 = vector.extract_strided_slice %194 {offsets = [0, 32], sizes = [16, 32], strides = [1, 1]} : vector<16x96xf32> to vector<16x32xf32>
    %198 = vector.shape_cast %197 : vector<16x32xf32> to vector<2x8x32xf32>
    %199 = vector.extract_strided_slice %194 {offsets = [0, 64], sizes = [16, 32], strides = [1, 1]} : vector<16x96xf32> to vector<16x32xf32>
    %200 = vector.shape_cast %199 : vector<16x32xf32> to vector<2x8x32xf32>
    %201 = vector.extract_strided_slice %196 {offsets = [0, 0, 0], sizes = [2, 8, 8], strides = [1, 1, 1]} : vector<2x8x32xf32> to vector<2x8x8xf32>
    %202 = vector.extract_strided_slice %196 {offsets = [0, 0, 8], sizes = [2, 8, 8], strides = [1, 1, 1]} : vector<2x8x32xf32> to vector<2x8x8xf32>
    %203 = vector.extract_strided_slice %196 {offsets = [0, 0, 16], sizes = [2, 8, 8], strides = [1, 1, 1]} : vector<2x8x32xf32> to vector<2x8x8xf32>
    %204 = vector.extract_strided_slice %196 {offsets = [0, 0, 24], sizes = [2, 8, 8], strides = [1, 1, 1]} : vector<2x8x32xf32> to vector<2x8x8xf32>
    %205 = tpu.concatenate %201, %202, %203, %204 in 0 : vector<2x8x8xf32>, vector<2x8x8xf32>, vector<2x8x8xf32>, vector<2x8x8xf32> -> vector<8x8x8xf32>
    %206 = vector.extract_strided_slice %198 {offsets = [0, 0, 0], sizes = [2, 8, 8], strides = [1, 1, 1]} : vector<2x8x32xf32> to vector<2x8x8xf32>
    %207 = vector.extract_strided_slice %198 {offsets = [0, 0, 8], sizes = [2, 8, 8], strides = [1, 1, 1]} : vector<2x8x32xf32> to vector<2x8x8xf32>
    %208 = vector.extract_strided_slice %198 {offsets = [0, 0, 16], sizes = [2, 8, 8], strides = [1, 1, 1]} : vector<2x8x32xf32> to vector<2x8x8xf32>
    %209 = vector.extract_strided_slice %198 {offsets = [0, 0, 24], sizes = [2, 8, 8], strides = [1, 1, 1]} : vector<2x8x32xf32> to vector<2x8x8xf32>
    %210 = tpu.concatenate %206, %207, %208, %209 in 0 : vector<2x8x8xf32>, vector<2x8x8xf32>, vector<2x8x8xf32>, vector<2x8x8xf32> -> vector<8x8x8xf32>
    %211 = vector.extract_strided_slice %200 {offsets = [0, 0, 0], sizes = [2, 8, 8], strides = [1, 1, 1]} : vector<2x8x32xf32> to vector<2x8x8xf32>
    %212 = vector.extract_strided_slice %200 {offsets = [0, 0, 8], sizes = [2, 8, 8], strides = [1, 1, 1]} : vector<2x8x32xf32> to vector<2x8x8xf32>
    %213 = vector.extract_strided_slice %200 {offsets = [0, 0, 16], sizes = [2, 8, 8], strides = [1, 1, 1]} : vector<2x8x32xf32> to vector<2x8x8xf32>
    %214 = vector.extract_strided_slice %200 {offsets = [0, 0, 24], sizes = [2, 8, 8], strides = [1, 1, 1]} : vector<2x8x32xf32> to vector<2x8x8xf32>
    %215 = tpu.concatenate %211, %212, %213, %214 in 0 : vector<2x8x8xf32>, vector<2x8x8xf32>, vector<2x8x8xf32>, vector<2x8x8xf32> -> vector<8x8x8xf32>
    "tpu.trace_start"() <{level = 10 : i32, message = "znd,zmd->znm"}> : () -> ()
    %cst_69 = arith.constant dense<0.000000e+00> : vector<8x8x8xf32>
    %216 = tpu.matmul %205, %210, %cst_69 {dimension_numbers = #tpu.dot_dimension_numbers<[2], [2], [1], [1], [0, 0, 0, 1, 1, 1], [0], [0]>} : vector<8x8x8xf32>, vector<8x8x8xf32>, vector<8x8x8xf32> -> vector<8x8x8xf32>
    "tpu.trace_stop"() : () -> ()
    %cst_70 = arith.constant 0.353553385 : f32
    %217 = vector.broadcast %cst_70 : f32 to vector<8x8x8xf32>
    %218 = arith.mulf %216, %217 : vector<8x8x8xf32>
    %cst_71 = arith.constant -1.000000e+30 : f32
    %219 = vector.broadcast %cst_71 : f32 to vector<8x8x8xf32>
    %220 = arith.select %11, %218, %219 : vector<8x8x8xi1>, vector<8x8x8xf32>
    %cst_72 = arith.constant dense<0xFF800000> : vector<8x8xf32>
    %221 = vector.multi_reduction <maximumf>, %220, %cst_72 [2] : vector<8x8x8xf32> to vector<8x8xf32>
    %222 = vector.shape_cast %221 : vector<8x8xf32> to vector<8x8x1xf32>
    %223 = vector.broadcast %222 : vector<8x8x1xf32> to vector<8x8x8xf32>
    %224 = arith.subf %220, %223 : vector<8x8x8xf32>
    %225 = math.exp %224 : vector<8x8x8xf32>
    %cst_73 = arith.constant dense<0.000000e+00> : vector<8x8xf32>
    %226 = vector.multi_reduction <add>, %225, %cst_73 [2] : vector<8x8x8xf32> to vector<8x8xf32>
    %227 = vector.shape_cast %226 : vector<8x8xf32> to vector<8x8x1xf32>
    %228 = tpu.reciprocal %227 {approx = true} : vector<8x8x1xf32> -> vector<8x8x1xf32>
    %229 = vector.broadcast %228 : vector<8x8x1xf32> to vector<8x8x8xf32>
    %230 = arith.mulf %225, %229 : vector<8x8x8xf32>
    "tpu.trace_start"() <{level = 10 : i32, message = "znm,zmd->znd"}> : () -> ()
    %cst_74 = arith.constant dense<0.000000e+00> : vector<8x8x8xf32>
    %231 = tpu.matmul %230, %215, %cst_74 {dimension_numbers = #tpu.dot_dimension_numbers<[2], [1], [1], [2], [0, 0, 0, 1, 1, 2], [0], [0]>} : vector<8x8x8xf32>, vector<8x8x8xf32>, vector<8x8x8xf32> -> vector<8x8x8xf32>
    "tpu.trace_stop"() : () -> ()
    %232 = vector.extract_strided_slice %231 {offsets = [0, 0, 0], sizes = [2, 8, 8], strides = [1, 1, 1]} : vector<8x8x8xf32> to vector<2x8x8xf32>
    %233 = vector.extract_strided_slice %231 {offsets = [2, 0, 0], sizes = [2, 8, 8], strides = [1, 1, 1]} : vector<8x8x8xf32> to vector<2x8x8xf32>
    %234 = vector.extract_strided_slice %231 {offsets = [4, 0, 0], sizes = [2, 8, 8], strides = [1, 1, 1]} : vector<8x8x8xf32> to vector<2x8x8xf32>
    %235 = vector.extract_strided_slice %231 {offsets = [6, 0, 0], sizes = [2, 8, 8], strides = [1, 1, 1]} : vector<8x8x8xf32> to vector<2x8x8xf32>
    %236 = tpu.concatenate %232, %233, %234, %235 in 2 : vector<2x8x8xf32>, vector<2x8x8xf32>, vector<2x8x8xf32>, vector<2x8x8xf32> -> vector<2x8x32xf32>
    %237 = vector.shape_cast %236 : vector<2x8x32xf32> to vector<16x32xf32>
    %c1_75 = arith.constant 1 : index
    %c0_76 = arith.constant 0 : index
    %c0_77 = arith.constant 0 : index
    %238 = vector.load %arg4[%c1_75, %c0_76, %c0_77] : memref<2x32x32xf32, #tpu.memory_space<vmem>>, vector<1x32x32xf32>
    %239 = vector.shape_cast %238 : vector<1x32x32xf32> to vector<32x32xf32>
    %cst_78 = arith.constant dense<0.000000e+00> : vector<16x32xf32>
    %240 = tpu.matmul %237, %239, %cst_78 {dimension_numbers = #tpu.dot_dimension_numbers<[1], [0], [0], [1], [0, 0, 1, 1], [], []>} : vector<16x32xf32>, vector<32x32xf32>, vector<16x32xf32> -> vector<16x32xf32>
    %c14 = arith.constant 14 : index
    %c0_79 = arith.constant 0 : index
    %241 = vector.load %arg8[%c14, %c0_79] : memref<17x128xf32, #tpu.memory_space<vmem>>, vector<1x32xf32>
    %242 = vector.broadcast %241 : vector<1x32xf32> to vector<16x32xf32>
    %243 = arith.addf %240, %242 : vector<16x32xf32>
    %244 = arith.addf %170, %243 : vector<16x32xf32>
    %cst_80 = arith.constant dense<0.000000e+00> : vector<16xf32>
    %245 = vector.multi_reduction <add>, %244, %cst_80 [1] : vector<16x32xf32> to vector<16xf32>
    %246 = vector.shape_cast %245 : vector<16xf32> to vector<16x1xf32>
    %cst_81 = arith.constant 3.200000e+01 : f32
    %247 = vector.broadcast %cst_81 : f32 to vector<16x1xf32>
    %248 = arith.divf %246, %247 : vector<16x1xf32>
    %249 = vector.broadcast %248 : vector<16x1xf32> to vector<16x32xf32>
    %250 = arith.subf %244, %249 : vector<16x32xf32>
    %251 = arith.mulf %250, %250 : vector<16x32xf32>
    %cst_82 = arith.constant dense<0.000000e+00> : vector<16xf32>
    %252 = vector.multi_reduction <add>, %251, %cst_82 [1] : vector<16x32xf32> to vector<16xf32>
    %253 = vector.shape_cast %252 : vector<16xf32> to vector<16x1xf32>
    %cst_83 = arith.constant 3.200000e+01 : f32
    %254 = vector.broadcast %cst_83 : f32 to vector<16x1xf32>
    %255 = arith.divf %253, %254 : vector<16x1xf32>
    %256 = vector.broadcast %248 : vector<16x1xf32> to vector<16x32xf32>
    %257 = arith.subf %244, %256 : vector<16x32xf32>
    %cst_84 = arith.constant 9.99999974E-6 : f32
    %258 = vector.broadcast %cst_84 : f32 to vector<16x1xf32>
    %259 = arith.addf %255, %258 : vector<16x1xf32>
    %260 = math.rsqrt %259 : vector<16x1xf32>
    %261 = vector.broadcast %260 : vector<16x1xf32> to vector<16x32xf32>
    %262 = arith.mulf %257, %261 : vector<16x32xf32>
    %c1_85 = arith.constant 1 : index
    %c0_86 = arith.constant 0 : index
    %c0_87 = arith.constant 0 : index
    %263 = vector.load %arg5[%c1_85, %c0_86, %c0_87] : memref<2x32x64xf32, #tpu.memory_space<vmem>>, vector<1x32x64xf32>
    %264 = vector.shape_cast %263 : vector<1x32x64xf32> to vector<32x64xf32>
    %cst_88 = arith.constant dense<0.000000e+00> : vector<16x64xf32>
    %265 = tpu.matmul %262, %264, %cst_88 {dimension_numbers = #tpu.dot_dimension_numbers<[1], [0], [0], [1], [0, 0, 1, 1], [], []>} : vector<16x32xf32>, vector<32x64xf32>, vector<16x64xf32> -> vector<16x64xf32>
    %c15 = arith.constant 15 : index
    %c0_89 = arith.constant 0 : index
    %266 = vector.load %arg8[%c15, %c0_89] : memref<17x128xf32, #tpu.memory_space<vmem>>, vector<1x64xf32>
    %267 = vector.broadcast %266 : vector<1x64xf32> to vector<16x64xf32>
    %268 = arith.addf %265, %267 : vector<16x64xf32>
    %cst_90 = arith.constant 5.000000e-01 : f32
    %269 = vector.broadcast %cst_90 : f32 to vector<16x64xf32>
    %270 = arith.mulf %269, %268 : vector<16x64xf32>
    %cst_91 = arith.constant 0.707106769 : f32
    %271 = vector.broadcast %cst_91 : f32 to vector<16x64xf32>
    %272 = arith.mulf %268, %271 : vector<16x64xf32>
    %273 = math.absf %272 : vector<16x64xf32>
    %cst_92 = arith.constant 5.000000e-01 : f32
    %274 = vector.broadcast %cst_92 : f32 to vector<16x64xf32>
    %275 = arith.mulf %274, %273 : vector<16x64xf32>
    %cst_93 = arith.constant 1.000000e+00 : f32
    %276 = vector.broadcast %cst_93 : f32 to vector<16x64xf32>
    %277 = arith.addf %276, %275 : vector<16x64xf32>
    %278 = tpu.reciprocal %277 {approx = true} : vector<16x64xf32> -> vector<16x64xf32>
    %cst_94 = arith.constant 0.000000e+00 : f32
    %279 = vector.broadcast %cst_94 : f32 to vector<16x64xf32>
    %280 = arith.subf %279, %273 : vector<16x64xf32>
    %281 = arith.mulf %280, %273 : vector<16x64xf32>
    %cst_95 = arith.constant 1.26551223 : f32
    %282 = vector.broadcast %cst_95 : f32 to vector<16x64xf32>
    %283 = arith.subf %281, %282 : vector<16x64xf32>
    %cst_96 = arith.constant 0.170872763 : f32
    %284 = vector.broadcast %cst_96 : f32 to vector<16x64xf32>
    %285 = arith.mulf %278, %284 : vector<16x64xf32>
    %cst_97 = arith.constant -0.822152256 : f32
    %286 = vector.broadcast %cst_97 : f32 to vector<16x64xf32>
    %287 = arith.addf %286, %285 : vector<16x64xf32>
    %288 = arith.mulf %278, %287 : vector<16x64xf32>
    %cst_98 = arith.constant 1.48851585 : f32
    %289 = vector.broadcast %cst_98 : f32 to vector<16x64xf32>
    %290 = arith.addf %289, %288 : vector<16x64xf32>
    %291 = arith.mulf %278, %290 : vector<16x64xf32>
    %cst_99 = arith.constant -1.13520396 : f32
    %292 = vector.broadcast %cst_99 : f32 to vector<16x64xf32>
    %293 = arith.addf %292, %291 : vector<16x64xf32>
    %294 = arith.mulf %278, %293 : vector<16x64xf32>
    %cst_100 = arith.constant 0.278868079 : f32
    %295 = vector.broadcast %cst_100 : f32 to vector<16x64xf32>
    %296 = arith.addf %295, %294 : vector<16x64xf32>
    %297 = arith.mulf %278, %296 : vector<16x64xf32>
    %cst_101 = arith.constant -0.186288059 : f32
    %298 = vector.broadcast %cst_101 : f32 to vector<16x64xf32>
    %299 = arith.addf %298, %297 : vector<16x64xf32>
    %300 = arith.mulf %278, %299 : vector<16x64xf32>
    %cst_102 = arith.constant 0.0967841818 : f32
    %301 = vector.broadcast %cst_102 : f32 to vector<16x64xf32>
    %302 = arith.addf %301, %300 : vector<16x64xf32>
    %303 = arith.mulf %278, %302 : vector<16x64xf32>
    %cst_103 = arith.constant 0.374091953 : f32
    %304 = vector.broadcast %cst_103 : f32 to vector<16x64xf32>
    %305 = arith.addf %304, %303 : vector<16x64xf32>
    %306 = arith.mulf %278, %305 : vector<16x64xf32>
    %cst_104 = arith.constant 1.00002372 : f32
    %307 = vector.broadcast %cst_104 : f32 to vector<16x64xf32>
    %308 = arith.addf %307, %306 : vector<16x64xf32>
    %309 = arith.mulf %278, %308 : vector<16x64xf32>
    %310 = arith.addf %283, %309 : vector<16x64xf32>
    %311 = math.exp %310 : vector<16x64xf32>
    %312 = arith.mulf %278, %311 : vector<16x64xf32>
    %cst_105 = arith.constant 0.000000e+00 : f32
    %313 = vector.broadcast %cst_105 : f32 to vector<16x64xf32>
    %314 = arith.cmpf oge, %272, %313 : vector<16x64xf32>
    %cst_106 = arith.constant 2.000000e+00 : f32
    %315 = vector.broadcast %cst_106 : f32 to vector<16x64xf32>
    %316 = arith.subf %315, %312 : vector<16x64xf32>
    %317 = arith.select %314, %312, %316 : vector<16x64xi1>, vector<16x64xf32>
    %cst_107 = arith.constant 1.000000e+00 : f32
    %318 = vector.broadcast %cst_107 : f32 to vector<16x64xf32>
    %319 = arith.subf %318, %317 : vector<16x64xf32>
    %cst_108 = arith.constant 1.000000e+00 : f32
    %320 = vector.broadcast %cst_108 : f32 to vector<16x64xf32>
    %321 = arith.addf %320, %319 : vector<16x64xf32>
    %322 = arith.mulf %270, %321 : vector<16x64xf32>
    %c1_109 = arith.constant 1 : index
    %c0_110 = arith.constant 0 : index
    %c0_111 = arith.constant 0 : index
    %323 = vector.load %arg6[%c1_109, %c0_110, %c0_111] : memref<2x64x32xf32, #tpu.memory_space<vmem>>, vector<1x64x32xf32>
    %324 = vector.shape_cast %323 : vector<1x64x32xf32> to vector<64x32xf32>
    %cst_112 = arith.constant dense<0.000000e+00> : vector<16x32xf32>
    %325 = tpu.matmul %322, %324, %cst_112 {dimension_numbers = #tpu.dot_dimension_numbers<[1], [0], [0], [1], [0, 0, 1, 1], [], []>} : vector<16x64xf32>, vector<64x32xf32>, vector<16x32xf32> -> vector<16x32xf32>
    %c16 = arith.constant 16 : index
    %c0_113 = arith.constant 0 : index
    %326 = vector.load %arg8[%c16, %c0_113] : memref<17x128xf32, #tpu.memory_space<vmem>>, vector<1x32xf32>
    %327 = vector.broadcast %326 : vector<1x32xf32> to vector<16x32xf32>
    %328 = arith.addf %325, %327 : vector<16x32xf32>
    %329 = arith.addf %244, %328 : vector<16x32xf32>
    %330 = vector.shape_cast %329 : vector<16x32xf32> to vector<2x8x32xf32>
    %331 = vector.extract_strided_slice %330 {offsets = [0, 0, 0], sizes = [2, 1, 32], strides = [1, 1, 1]} : vector<2x8x32xf32> to vector<2x1x32xf32>
    %332 = vector.shape_cast %331 : vector<2x1x32xf32> to vector<2x32xf32>
    %cst_114 = arith.constant dense<0.000000e+00> : vector<2xf32>
    %333 = vector.multi_reduction <add>, %332, %cst_114 [1] : vector<2x32xf32> to vector<2xf32>
    %334 = vector.shape_cast %333 : vector<2xf32> to vector<2x1xf32>
    %cst_115 = arith.constant 3.200000e+01 : f32
    %335 = vector.broadcast %cst_115 : f32 to vector<2x1xf32>
    %336 = arith.divf %334, %335 : vector<2x1xf32>
    %337 = vector.broadcast %336 : vector<2x1xf32> to vector<2x32xf32>
    %338 = arith.subf %332, %337 : vector<2x32xf32>
    %339 = arith.mulf %338, %338 : vector<2x32xf32>
    %cst_116 = arith.constant dense<0.000000e+00> : vector<2xf32>
    %340 = vector.multi_reduction <add>, %339, %cst_116 [1] : vector<2x32xf32> to vector<2xf32>
    %341 = vector.shape_cast %340 : vector<2xf32> to vector<2x1xf32>
    %cst_117 = arith.constant 3.200000e+01 : f32
    %342 = vector.broadcast %cst_117 : f32 to vector<2x1xf32>
    %343 = arith.divf %341, %342 : vector<2x1xf32>
    %344 = vector.broadcast %336 : vector<2x1xf32> to vector<2x32xf32>
    %345 = arith.subf %332, %344 : vector<2x32xf32>
    %cst_118 = arith.constant 9.99999974E-6 : f32
    %346 = vector.broadcast %cst_118 : f32 to vector<2x1xf32>
    %347 = arith.addf %343, %346 : vector<2x1xf32>
    %348 = math.rsqrt %347 : vector<2x1xf32>
    %349 = vector.broadcast %348 : vector<2x1xf32> to vector<2x32xf32>
    %350 = arith.mulf %345, %349 : vector<2x32xf32>
    %c0_119 = arith.constant 0 : index
    %c0_120 = arith.constant 0 : index
    %351 = vector.load %arg7[%c0_119, %c0_120] : memref<32x128xf32, #tpu.memory_space<vmem>>, vector<32x128xf32>
    %cst_121 = arith.constant dense<0.000000e+00> : vector<2x128xf32>
    %352 = tpu.matmul %350, %351, %cst_121 {dimension_numbers = #tpu.dot_dimension_numbers<[1], [0], [0], [1], [0, 0, 1, 1], [], []>} : vector<2x32xf32>, vector<32x128xf32>, vector<2x128xf32> -> vector<2x128xf32>
    %c8 = arith.constant 8 : index
    %c0_122 = arith.constant 0 : index
    %353 = vector.load %arg8[%c8, %c0_122] : memref<17x128xf32, #tpu.memory_space<vmem>>, vector<1x128xf32>
    %354 = vector.broadcast %353 : vector<1x128xf32> to vector<2x128xf32>
    %355 = arith.addf %352, %354 : vector<2x128xf32>
    %c0_123 = arith.constant 0 : index
    %c0_124 = arith.constant 0 : index
    %356 = vector.load %arg9[%c0_123, %c0_124] : memref<2x128xf32, #tpu.memory_space<vmem>>, vector<2x128xf32>
    tpu.vector_store %arg9[%c0_123, %c0_124], %355 {strides = array<i32>} : memref<2x128xf32, #tpu.memory_space<vmem>>, vector<2x128xf32>,
    return
  }
  func.func @transform_0(%arg0: i32) -> (i32, i32) {
    %c0_i32 = arith.constant 0 : i32
    %c0_i32_0 = arith.constant 0 : i32
    return %arg0, %c0_i32 : i32, i32
  }
  func.func @transform_1(%arg0: i32) -> (i32, i32) {
    %c0_i32 = arith.constant 0 : i32
    %c0_i32_0 = arith.constant 0 : i32
    %c0_i32_1 = arith.constant 0 : i32
    return %c0_i32, %c0_i32_0 : i32, i32
  }
  func.func @transform_2(%arg0: i32) -> (i32, i32, i32) {
    %c0_i32 = arith.constant 0 : i32
    %c0_i32_0 = arith.constant 0 : i32
    %c0_i32_1 = arith.constant 0 : i32
    %c0_i32_2 = arith.constant 0 : i32
    return %c0_i32, %c0_i32_0, %c0_i32_1 : i32, i32, i32
  }
  func.func @transform_3(%arg0: i32) -> (i32, i32, i32) {
    %c0_i32 = arith.constant 0 : i32
    %c0_i32_0 = arith.constant 0 : i32
    %c0_i32_1 = arith.constant 0 : i32
    %c0_i32_2 = arith.constant 0 : i32
    return %c0_i32, %c0_i32_0, %c0_i32_1 : i32, i32, i32
  }
  func.func @transform_4(%arg0: i32) -> (i32, i32, i32) {
    %c0_i32 = arith.constant 0 : i32
    %c0_i32_0 = arith.constant 0 : i32
    %c0_i32_1 = arith.constant 0 : i32
    %c0_i32_2 = arith.constant 0 : i32
    return %c0_i32, %c0_i32_0, %c0_i32_1 : i32, i32, i32
  }
  func.func @transform_5(%arg0: i32) -> (i32, i32, i32) {
    %c0_i32 = arith.constant 0 : i32
    %c0_i32_0 = arith.constant 0 : i32
    %c0_i32_1 = arith.constant 0 : i32
    %c0_i32_2 = arith.constant 0 : i32
    return %c0_i32, %c0_i32_0, %c0_i32_1 : i32, i32, i32
  }
  func.func @transform_6(%arg0: i32) -> (i32, i32) {
    %c0_i32 = arith.constant 0 : i32
    %c0_i32_0 = arith.constant 0 : i32
    %c0_i32_1 = arith.constant 0 : i32
    return %c0_i32, %c0_i32_0 : i32, i32
  }
  func.func @transform_7(%arg0: i32) -> (i32, i32) {
    %c0_i32 = arith.constant 0 : i32
    %c0_i32_0 = arith.constant 0 : i32
    %c0_i32_1 = arith.constant 0 : i32
    return %c0_i32, %c0_i32_0 : i32, i32
  }
  func.func @transform_8(%arg0: i32) -> (i32, i32) {
    %c0_i32 = arith.constant 0 : i32
    %c0_i32_0 = arith.constant 0 : i32
    return %arg0, %c0_i32 : i32, i32
  }
}

</mosaic_0001>

<bundles_post_ra>
// kernel: vit_forward.1
= control target key start
LH: loop header
LB: loop body
LE: loop exit
PB: predicated region body
PF: predicated region fallthrough
CT: control target
= control target key end

     0   :  { %s5653_s0 = inlined_call_operand.vmem [shape: f32[16,256], index: 0, kind: input, shape index: {}]   ;;  %s5654_s1 = inlined_call_operand.vmem [shape: f32[256,32], index: 1, kind: input, shape index: {}]   ;;  %s5655_s2 = inlined_call_operand.vmem [shape: f32[2,32,96], index: 2, kind: input, shape index: {}]   ;;  %s5656_s3 = inlined_call_operand.vmem [shape: f32[2,32,32], index: 3, kind: input, shape index: {}]   ;;  %s5657_s4 = inlined_call_operand.vmem [shape: f32[2,32,64], index: 4, kind: input, shape index: {}]   ;;  %s5658_s5 = inlined_call_operand.vmem [shape: f32[2,64,32], index: 5, kind: input, shape index: {}]   ;;  %s5659_s6 = inlined_call_operand.vmem [shape: f32[32,128], index: 6, kind: input, shape index: {}]   ;;  %s5660_s7 = inlined_call_operand.vmem [shape: f32[17,128], index: 7, kind: input, shape index: {}]   ;;  %s5661_s8 = inlined_call_operand.hbm [shape: f32[2,128], index: 8, kind: output, shape index: {}]  }
   0x1   :  { %v50_v0 = vld [vmem:[%s5654_s1 + $0x80] sm:$0xff]  ;;  %v51_v1 = vld [vmem:[%s5654_s1 + $0x88] sm:$0xff]  ;;  %v52_v5 = vld [vmem:[%s5654_s1 + $0x90] sm:$0xff] }
   0x2   :  { %v34_v2 = vld [vmem:[%s5654_s1] sm:$0xff]  ;;  %v4541_v3 = vpack.c.bf16 %v51_v1, %v50_v0  ;;  %v35_v4 = vld [vmem:[%s5654_s1 + $0x8] sm:$0xff]  ;;  %v53_v6 = vld [vmem:[%s5654_s1 + $0x98] sm:$0xff] }
   0x3   :  { %v4543_v7 = vpack.c.bf16 %v35_v4, %v34_v2  ;;  %v4545_v8 = vpack.c.bf16 %v53_v6, %v52_v5  ;;  %v36_v9 = vld [vmem:[%s5654_s1 + $0x10] sm:$0xff]  ;;  %v37_v10 = vld [vmem:[%s5654_s1 + $0x18] sm:$0xff]  ;;  %v54_v11 = vld [vmem:[%s5654_s1 + $0xa0] sm:$0xff] }
   0x4   :  { %4542 = vmatprep.subr.bf16.mxu0 %v4541_v3  ;;  %v55_v12 = vld [vmem:[%s5654_s1 + $0xa8] sm:$0xff]  ;;  %v4547_v13 = vpack.c.bf16 %v37_v10, %v36_v9  ;;  %v38_v15 = vld [vmem:[%s5654_s1 + $0x20] sm:$0xff]  ;;  %v56_v17 = vld [vmem:[%s5654_s1 + $0xb0] sm:$0xff] }
   0x5   :  { %4544 = vmatpush3.bf16.msra.mxu0 %v4543_v7  ;;  %v4549_v14 = vpack.c.bf16 %v55_v12, %v54_v11  ;;  %v39_v16 = vld [vmem:[%s5654_s1 + $0x28] sm:$0xff]  ;;  %v57_v18 = vld [vmem:[%s5654_s1 + $0xb8] sm:$0xff]  ;;  %v40_v21 = vld [vmem:[%s5654_s1 + $0x30] sm:$0xff] }
   0x6   :  { %4546 = vmatprep.subr.bf16.mxu0 %v4545_v8  ;;  %v4551_v19 = vpack.c.bf16 %v39_v16, %v38_v15  ;;  %v4553_v20 = vpack.c.bf16 %v57_v18, %v56_v17  ;;  %v41_v22 = vld [vmem:[%s5654_s1 + $0x38] sm:$0xff]  ;;  %v58_v23 = vld [vmem:[%s5654_s1 + $0xc0] sm:$0xff]  ;;  %v59_v24 = vld [vmem:[%s5654_s1 + $0xc8] sm:$0xff] }
   0x7   :  { %v31_v25 = vld [vmem:[%s5653_s0 + $0x8] sm:$0xff]  ;;  %v4555_v26 = vpack.c.bf16 %v41_v22, %v40_v21 }
   0x8   :  { %130 = vmatprep.mubr.f32.mxu0 %v31_v25 }
   0x9   :  { %4548 = vmatpush3.bf16.msra.mxu0 %v4547_v13 }
   0xa   :  { %4550 = vmatprep.subr.bf16.mxu0 %v4549_v14 }
   0xd   :  { %4552 = vmatpush3.bf16.msra.mxu0 %v4551_v19 }
   0xe   :  { %13 = vsyncpa [#allocation3], 0  ;;  %4554 = vmatprep.subr.bf16.mxu0 %v4553_v20  ;;  %v4557_v27 = vpack.c.bf16 %v59_v24, %v58_v23  ;;  %v42_v28 = vld [vmem:[%s5654_s1 + $0x40] sm:$0xff]  ;;  %v43_v29 = vld [vmem:[%s5654_s1 + $0x48] sm:$0xff]  ;;  %vm147_vm0 = vcmask 261120   ;;  %vm4794_vm1 = vmmov 0  }
   0xf   :  { %v60_v30 = vld [vmem:[%s5654_s1 + $0xd0] sm:$0xff]  ;;  %v61_v31 = vld [vmem:[%s5654_s1 + $0xd8] sm:$0xff]  ;;  %v4559_v32 = vpack.c.bf16 %v43_v29, %v42_v28  ;;  %v62_v36 = vld [vmem:[%s5654_s1 + $0xe0] sm:$0xff]  ;;  %s4795_s21 = smov 120   ;;  %s4796_s22 = smov 112   ;;  %vm281_vm2 = vcmask 64512  }
  0x10   :  { %v4561_v33 = vpack.c.bf16 %v61_v31, %v60_v30  ;;  %v44_v34 = vld [vmem:[%s5654_s1 + $0x50] sm:$0xff]  ;;  %v45_v35 = vld [vmem:[%s5654_s1 + $0x58] sm:$0xff]  ;;  %v63_v37 = vld [vmem:[%s5654_s1 + $0xe8] sm:$0xff]  ;;  %s4797_s23 = smov 104   ;;  %s4798_s24 = smov 96   ;;  %vm1626_vm4 = vcmask 130048  }
  0x11   :  { %4556 = vmatpush3.bf16.msra.mxu0 %v4555_v26  ;;  %v4563_v38 = vpack.c.bf16 %v45_v35, %v44_v34  ;;  %v4565_v39 = vpack.c.bf16 %v63_v37, %v62_v36  ;;  %v46_v40 = vld [vmem:[%s5654_s1 + $0x60] sm:$0xff]  ;;  %v47_v41 = vld [vmem:[%s5654_s1 + $0x68] sm:$0xff]  ;;  %v64_v42 = vld [vmem:[%s5654_s1 + $0xf0] sm:$0xff]  ;;  %v4793_v26 = vmov 0.0   ;;  %s4799_s25 = smov 64   ;;  %s4800_s26 = smov 8  }
  0x12   :  { %4558 = vmatprep.subr.bf16.mxu0 %v4557_v27  ;;  %v65_v43 = vld [vmem:[%s5654_s1 + $0xf8] sm:$0xff]  ;;  %v4567_v44 = vpack.c.bf16 %v47_v41, %v46_v40  ;;  %v48_v46 = vld [vmem:[%s5654_s1 + $0x70] sm:$0xff]  ;;  %v30_v49 = vld [vmem:[%s5653_s0] sm:$0xff]  ;;  %s4801_s9 = smov 16   ;;  %s4802_s12 = smov 24   ;;  %vm1629_vm5 = vcmask 195584  }
  0x13   :  { %v4569_v45 = vpack.c.bf16 %v65_v43, %v64_v42  ;;  %v49_v47 = vld [vmem:[%s5654_s1 + $0x78] sm:$0xff]  ;;  %v32_v51 = vld [vmem:[%s5653_s0 + $0x10] sm:$0xff]  ;;  %v141_v54 = vld [vmem:[%s5660_s7] sm:$0xff]  ;;  %vm1925_vm8 = vcmask 523264   ;;  %vm3872_vm11 = vcmask 1041409   ;;  %vm3875_vm12 = vcmask 254976  }
  0x14   :  { %v4571_v48 = vpack.c.bf16 %v49_v47, %v48_v46  ;;  %v33_v50 = vld [vmem:[%s5653_s0 + $0x18] sm:$0xff]  ;;  %v175_v9 = vld [vmem:[%s5655_s2] sm:$0xff]  ;;  %v176_v10 = vld [vmem:[%s5655_s2 + $0x8] sm:$0xff] }
  0x15   :  { %4560 = vmatpush3.bf16.msra.mxu0 %v4559_v32  ;;  %v177_v11 = vld [vmem:[%s5655_s2 + $0x10] sm:$0xff]  ;;  %v4573_v12 = vpack.c.bf16 %v176_v10, %v175_v9  ;;  %v178_v13 = vld [vmem:[%s5655_s2 + $0x18] sm:$0xff]  ;;  %v4005_v25 = vld [vmem:[%s5660_s7 + $0x9] ss:$0 sm:$0xff] }
  0x16   :  { %4562 = vmatprep.subr.bf16.mxu0 %v4561_v33  ;;  %v4577_v14 = vpack.c.bf16 %v178_v13, %v177_v11 }
  0x17   :  { %4574 = vmatprep.subr.bf16.mxu1 %v4573_v12 }
  0x18   :  { %4576 = vmatpush3.bf16.msra.mxu1 %v4573_v12 }
  0x19   :  { %4564 = vmatpush3.bf16.msra.mxu0 %v4563_v38  ;;  %4578 = vmatprep.subr.bf16.mxu1 %v4577_v14 }
  0x1a   :  { %4566 = vmatprep.subr.bf16.mxu0 %v4565_v39 }
  0x1c   :  { %4580 = vmatpush3.bf16.msra.mxu1 %v4577_v14 }
  0x1d   :  { %4568 = vmatpush3.bf16.msra.mxu0 %v4567_v44  ;;  %4277 = vmatprep.subr.mxu1 %v4793_v26 }
  0x1e   :  { %4570 = vmatprep.subr.bf16.mxu0 %v4569_v45  ;;  %v144_v45 = vlaneseq }
  0x20   :  { %v5088_v46 = vand.u32 127, %v144_v45 }
  0x21   :  { %4572 = vmatpush3.bf16.msra.mxu0 %v4571_v48 }
  0x22   :  { %4312 = vmatprep.subr.mxu0 %v4793_v26  ;;  %vm146_vm3 = vcmp.lt.s32.totalorder %v5088_v46, 5 }
  0x24   :  { %131 = vmatmul.mubr.f32.vlgmr.msra.gmra.mrb[0].mxu0 %v30_v49 }
  0x25   :  { %135 = vmatprep.mubr.f32.mxu0 %v33_v50 }
  0x28   :  { %136 = vmatmul.mubr.f32.gmra.mrb[2].mxu0 %v32_v51 }
  0x29   :  { %4314 = vmatprep.mubr.msk.f32.mxu0 %vm4794_vm1, %v4793_v26 }
  0xf7   :  { %v4135_v52 = vpop.f32.mrb[0].mxu0 }
  0xf8   :  { %v4136_v53 = vpop.f32.mrb[1].mxu0 }
  0xf9   :  { %v4137_v55 = vadd.f32 %v4136_v53, %v4135_v52 }
  0xfb   :  { %v4961_v56 = vadd.f32 %v4137_v55, %v141_v54  ;;  %v4138_v57 = vpop.f32.mrb[2].mxu0 }
  0xfc   :  { %v4139_v58 = vpop.f32.mrb[3].mxu0 }
  0xfd   :  { %v4140_v59 = vadd.f32 %v4139_v58, %v4138_v57  ;;  %v148_v60 = vsel %vm147_vm0, %v4961_v56, 0.0 }
  0xfe   :  { %149 = vadd.xlane.f32.xlu0 %v148_v60 }
  0xff   :  { %v4965_v61 = vadd.f32 %v4140_v59, %v141_v54 }
 0x101   :  { %v151_v62 = vsel %vm147_vm0, %v4965_v61, 0.0 }
 0x102   :  { %152 = vadd.xlane.f32.xlu0 %v151_v62 }
 0x18b   :  { %v150_v63 = vpop.xlane.xlu0 %149 }
 0x18c   :  { %v155_v0 = vmul.f32 0.03125, %v150_v63 }
 0x18e   :  { %v157_v1 = vsub.f32 %v4961_v56, %v155_v0 }
 0x18f   :  { %v153_v2 = vpop.xlane.xlu0 %152 }
 0x190   :  { %v156_v3 = vmul.f32 0.03125, %v153_v2  ;;  %v159_v4 = vmul.f32 %v157_v1, %v157_v1 }
 0x192   :  { %v158_v5 = vsub.f32 %v4965_v61, %v156_v3  ;;  %v161_v6 = vsel %vm147_vm0, %v159_v4, 0.0 }
 0x193   :  { %162 = vadd.xlane.f32.xlu1 %v161_v6 }
 0x194   :  { %v160_v7 = vmul.f32 %v158_v5, %v158_v5 }
 0x196   :  { %v164_v8 = vsel %vm147_vm0, %v160_v7, 0.0 }
 0x197   :  { %165 = vadd.xlane.f32.xlu1 %v164_v8 }
 0x220   :  { %v163_v15 = vpop.xlane.xlu1 %162 }
 0x221   :  { %v167_v16 = vmul.f32 0.03125, %v163_v15 }
 0x223   :  { %v169_v17 = vadd.f32 1e-05, %v167_v16 }
 0x224   :  { %v166_v18 = vpop.xlane.xlu1 %165 }
 0x225   :  { %4671 = vrsqrt.f32 %v169_v17  ;;  %v168_v19 = vmul.f32 0.03125, %v166_v18 }
 0x227   :  { %v170_v20 = vadd.f32 1e-05, %v168_v19 }
 0x229   :  { %4673 = vrsqrt.f32 %v170_v20 }
 0x22f   :  { %v4672_v21 = vpop.eup %4671 }
 0x230   :  { %v173_v22 = vmul.f32 %v4672_v21, %v157_v1 }
 0x232   :  { %4274 = vmatprep.mubr.msk.f32.mxu1 %vm147_vm0, %v173_v22 }
 0x233   :  { %v4674_v23 = vpop.eup %4673 }
 0x234   :  { %v174_v24 = vmul.f32 %v4674_v23, %v158_v5 }
 0x236   :  { %4275 = vmatmul.mubr.msk.f32.vlgmr.msra.gmra.mrb[0].mxu1 %vm147_vm0, %v174_v24 }
 0x237   :  { %4279 = vmatprep.mubr.msk.f32.mxu1 %vm4794_vm1, %v4793_v26 }
 0x309   :  { %v4276_v27 = vpop.f32.mrb[0].mxu1 }
 0x30a   :  { %v4996_v28 = vadd.f32 %v4276_v27, %v4005_v25  ;;  %v256_v29 = vpop.f32.mrb[1].mxu1 }
 0x30b   :  { %v4998_v30 = vadd.f32 %v4005_v25, %v256_v29 }
 0x30c   :  { %269 = vrot.lane.b32.xlu1 %v4996_v28, %s4795_s21 }
 0x30d   :  { %267 = vrot.lane.b32.xlu0 %v4998_v30, %s4795_s21 }
 0x310   :  { %271 = vrot.lane.b32.xlu1 %v4998_v30, %s4796_s22 }
 0x311   :  { %275 = vrot.lane.b32.xlu0 %v4998_v30, %s4797_s23 }
 0x314   :  { %273 = vrot.lane.b32.xlu1 %v4996_v28, %s4796_s22 }
 0x315   :  { %279 = vrot.lane.b32.xlu0 %v4998_v30, %s4798_s24 }
 0x318   :  { %277 = vrot.lane.b32.xlu1 %v4996_v28, %s4797_s23 }
 0x31c   :  { %356 = vrot.lane.b32.xlu1 %v4996_v28, %s4798_s24 }
 0x37e   :  { %v5016_v31 = vpop.permute.xlu1 %269 }
 0x37f   :  { %508 = vrot.lane.b32.xlu1 %v5016_v31, %s4798_s24  ;;  %v5020_v32 = vpop.permute.xlu0 %267 }
 0x380   :  { %432 = vrot.lane.b32.xlu0 %v5020_v32, %s4798_s24 }
 0x382   :  { %v5024_v33 = vpop.permute.xlu1 %271 }
 0x383   :  { %v5026_v34 = vpop.permute.xlu0 %275 }
 0x384   :  { %584 = vrot.lane.b32.xlu0 %v5024_v33, %s4798_s24 }
 0x386   :  { %v5030_v35 = vpop.permute.xlu1 %273 }
 0x387   :  { %660 = vrot.lane.b32.xlu1 %v5030_v35, %s4798_s24  ;;  %v280_v36 = vpop.permute.xlu0 %279 }
 0x388   :  { %736 = vrot.lane.b32.xlu0 %v5026_v34, %s4798_s24  ;;  %4278 = vmatpush3.xpose.msk.msra.mxu1 %vm281_vm2, %v280_v36 }
 0x389   :  { %4282 = vmatprep.subr.mxu1 %v4793_v26 }
 0x38a   :  { %v5038_v37 = vpop.permute.xlu1 %277 }
 0x38b   :  { %812 = vrot.lane.b32.xlu1 %v5038_v37, %s4798_s24  ;;  %4280 = vmatmul.mubr.msk.f32.vlgmr.msra.gmra.mrb[2].mxu1 %vm281_vm2, %v4998_v30 }
 0x38c   :  { %4284 = vmatprep.mubr.msk.f32.mxu1 %vm4794_vm1, %v4793_v26 }
 0x38e   :  { %v357_v38 = vpop.permute.xlu1 %356 }
 0x38f   :  { %4283 = vmatpush3.xpose.msk.msra.mxu1 %vm281_vm2, %v357_v38 }
 0x390   :  { %4287 = vmatprep.subr.mxu1 %v4793_v26 }
 0x392   :  { %4285 = vmatmul.mubr.msk.f32.vlgmr.msra.gmra.mrb[4].mxu1 %vm281_vm2, %v4996_v28 }
 0x393   :  { %4289 = vmatprep.mubr.msk.f32.mxu1 %vm4794_vm1, %v4793_v26 }
 0x3f1   :  { %v509_v40 = vpop.permute.xlu1 %508 }
 0x3f2   :  { %v433_v39 = vpop.permute.xlu0 %432 }
 0x3f3   :  { %4288 = vmatpush3.xpose.msk.msra.mxu1 %vm281_vm2, %v433_v39 }
 0x3f4   :  { %4292 = vmatprep.subr.mxu1 %v4793_v26 }
 0x3f6   :  { %4290 = vmatmul.mubr.msk.f32.vlgmr.msra.gmra.mrb[6].mxu1 %vm281_vm2, %v5020_v32  ;;  %v585_v42 = vpop.permute.xlu0 %584 }
 0x3f7   :  { %4293 = vmatpush3.xpose.msk.msra.mxu1 %vm281_vm2, %v509_v40  ;;  %4294 = vmatprep.mubr.msk.f32.mxu1 %vm4794_vm1, %v4793_v26 }
 0x3f8   :  { %4297 = vmatprep.subr.mxu1 %v4793_v26 }
 0x3f9   :  { %v661_v41 = vpop.permute.xlu1 %660 }
 0x3fa   :  { %4295 = vmatmul.mubr.msk.f32.vlgmr.msra.gmra.mrb[8].mxu1 %vm281_vm2, %v5016_v31  ;;  %v737_v44 = vpop.permute.xlu0 %736 }
 0x3fb   :  { %4298 = vmatpush3.xpose.msk.msra.mxu1 %vm281_vm2, %v585_v42  ;;  %4299 = vmatprep.mubr.msk.f32.mxu1 %vm4794_vm1, %v4793_v26 }
 0x3fc   :  { %4302 = vmatprep.subr.mxu1 %v4793_v26 }
 0x3fd   :  { %v813_v43 = vpop.permute.xlu1 %812 }
 0x3fe   :  { %4300 = vmatmul.mubr.msk.f32.vlgmr.msra.gmra.mrb[10].mxu1 %vm281_vm2, %v5024_v33  ;;  %4313 = vmatpush3.xpose.msk.msra.mxu0 %vm281_vm2, %v813_v43 }
 0x3ff   :  { %4303 = vmatpush3.xpose.msk.msra.mxu1 %vm281_vm2, %v661_v41  ;;  %4304 = vmatprep.mubr.msk.f32.mxu1 %vm4794_vm1, %v4793_v26 }
 0x400   :  { %4307 = vmatprep.subr.mxu1 %v4793_v26  ;;  %4322 = vmatprep.subr.mxu0 %v4793_v26 }
 0x401   :  { %4315 = vmatmul.mubr.msk.f32.vlgmr.msra.gmra.mrb[4].mxu0 %vm281_vm2, %v5038_v37 }
 0x402   :  { %4305 = vmatmul.mubr.msk.f32.vlgmr.msra.gmra.mrb[12].mxu1 %vm281_vm2, %v5030_v35  ;;  %4324 = vmatprep.mubr.msk.f32.mxu0 %vm4794_vm1, %v4793_v26 }
 0x403   :  { %4308 = vmatpush3.xpose.msk.msra.mxu1 %vm281_vm2, %v737_v44  ;;  %4309 = vmatprep.mubr.msk.f32.mxu1 %vm4794_vm1, %v4793_v26 }
 0x404   :  { %4317 = vmatprep.subr.mxu1 %v4793_v26 }
 0x406   :  { %4310 = vmatmul.mubr.msk.f32.vlgmr.msra.gmra.mrb[14].mxu1 %vm281_vm2, %v5026_v34 }
 0x407   :  { %4319 = vmatprep.mubr.msk.f32.mxu1 %vm4794_vm1, %v4793_v26 }
 0x45e   :  { %v352_v47 = vpop.f32.mrb[2].mxu1 }
 0x45f   :  { %v888_v48 = vmul.f32 0.35355338, %v352_v47  ;;  %v4281_v49 = vpop.f32.mrb[3].mxu1 }
 0x461   :  { %v896_v50 = vsel %vm146_vm3, %v888_v48, -1e+30 }
 0x462   :  { %v904_v51 = vsel %vm281_vm2, %v896_v50, -inf }
 0x463   :  { %905 = vmax.xlane.f32.xlu0 %v904_v51 }
 0x465   :  { %v428_v52 = vpop.f32.mrb[4].mxu1 }
 0x466   :  { %v889_v53 = vmul.f32 0.35355338, %v428_v52  ;;  %v4286_v54 = vpop.f32.mrb[5].mxu1 }
 0x468   :  { %v897_v55 = vsel %vm146_vm3, %v889_v53, -1e+30 }
 0x469   :  { %v907_v57 = vsel %vm281_vm2, %v897_v55, -inf }
 0x46a   :  { %908 = vmax.xlane.f32.xlu1 %v907_v57 }
 0x4c9   :  { %v504_v58 = vpop.f32.mrb[6].mxu1 }
 0x4ca   :  { %v890_v59 = vmul.f32 0.35355338, %v504_v58  ;;  %v4291_v60 = vpop.f32.mrb[7].mxu1 }
 0x4cc   :  { %v898_v62 = vsel %vm146_vm3, %v890_v59, -1e+30 }
 0x4cd   :  { %v580_v63 = vpop.f32.mrb[8].mxu1  ;;  %v910_v0 = vsel %vm281_vm2, %v898_v62, -inf }
 0x4ce   :  { %v891_v1 = vmul.f32 0.35355338, %v580_v63  ;;  %911 = vmax.xlane.f32.xlu0 %v910_v0  ;;  %v4296_v2 = vpop.f32.mrb[9].mxu1 }
 0x4d0   :  { %v5102_v3 = vsel %vm146_vm3, %v891_v1, -1e+30 }
 0x4d1   :  { %v656_v4 = vpop.f32.mrb[10].mxu1  ;;  %v913_v5 = vsel %vm281_vm2, %v5102_v3, -inf }
 0x4d2   :  { %v892_v6 = vmul.f32 0.35355338, %v656_v4  ;;  %914 = vmax.xlane.f32.xlu0 %v913_v5  ;;  %v4301_v7 = vpop.f32.mrb[11].mxu1 }
 0x4d4   :  { %v884_v8 = vpop.f32.mrb[4].mxu0  ;;  %v900_v9 = vsel %vm146_vm3, %v892_v6, -1e+30 }
 0x4d5   :  { %v732_v10 = vpop.f32.mrb[12].mxu1  ;;  %v4316_v11 = vpop.f32.mrb[5].mxu0  ;;  %v916_v12 = vsel %vm281_vm2, %v900_v9, -inf  ;;  %v895_v13 = vmul.f32 0.35355338, %v884_v8 }
 0x4d6   :  { %v893_v14 = vmul.f32 0.35355338, %v732_v10  ;;  %917 = vmax.xlane.f32.xlu0 %v916_v12  ;;  %v4306_v15 = vpop.f32.mrb[13].mxu1 }
 0x4d7   :  { %v903_v21 = vsel %vm146_vm3, %v895_v13, -1e+30 }
 0x4d8   :  { %v5111_v16 = vsel %vm146_vm3, %v893_v14, -1e+30  ;;  %v925_v23 = vsel %vm281_vm2, %v903_v21, -inf }
 0x4d9   :  { %v808_v17 = vpop.f32.mrb[14].mxu1  ;;  %v919_v18 = vsel %vm281_vm2, %v5111_v16, -inf }
 0x4da   :  { %v894_v19 = vmul.f32 0.35355338, %v808_v17  ;;  %920 = vmax.xlane.f32.xlu1 %v919_v18  ;;  %v4311_v20 = vpop.f32.mrb[15].mxu1 }
 0x4dc   :  { %v902_v22 = vsel %vm146_vm3, %v894_v19, -1e+30 }
 0x4dd   :  { %v922_v24 = vsel %vm281_vm2, %v902_v22, -inf }
 0x4de   :  { %926 = vmax.xlane.f32.xlu1 %v925_v23  ;;  %923 = vmax.xlane.f32.xlu0 %v922_v24 }
 0x4ef   :  { %1068 = vrot.lane.b32.xlu1 %v4996_v28, %s4799_s25 }
 0x4f0   :  { %v906_v25 = vpop.xlane.xlu0 %905 }
 0x4f1   :  { %v928_v27 = vsub.f32 %v896_v50, %v906_v25 }
 0x4f3   :  { %1144 = vrot.lane.b32.xlu1 %v5020_v32, %s4799_s25  ;;  %v936_v29 = vmul.f32 1.442695, %v928_v27 }
 0x4f4   :  { %992 = vrot.lane.b32.xlu0 %v4998_v30, %s4799_s25 }
 0x4f5   :  { %4675 = vpow2.f32 %v936_v29 }
 0x4f7   :  { %1220 = vrot.lane.b32.xlu1 %v5016_v31, %s4799_s25  ;;  %v909_v36 = vpop.xlane.xlu1 %908 }
 0x4f8   :  { %1296 = vrot.lane.b32.xlu0 %v5024_v33, %s4799_s25  ;;  %v929_v28 = vsub.f32 %v897_v55, %v909_v36 }
 0x4fa   :  { %v938_v38 = vmul.f32 1.442695, %v929_v28 }
 0x4fb   :  { %1372 = vrot.lane.b32.xlu1 %v5030_v35, %s4799_s25 }
 0x4fc   :  { %4677 = vpow2.f32 %v938_v38 }
 0x4ff   :  { %v5133_v32 = vpop.eup %4675 }
 0x500   :  { %v952_v30 = vsel %vm281_vm2, %v5133_v32, 0.0 }
 0x506   :  { %v5137_v31 = vpop.eup %4677 }
 0x507   :  { %v955_v33 = vsel %vm281_vm2, %v5137_v31, 0.0 }
 0x517   :  { %953 = vadd.xlane.f32.xlu0 %v952_v30 }
 0x51f   :  { %956 = vadd.xlane.f32.xlu1 %v955_v33 }
 0x55b   :  { %v912_v35 = vpop.xlane.xlu0 %911 }
 0x55c   :  { %v930_v39 = vsub.f32 %v898_v62, %v912_v35 }
 0x55e   :  { %v940_v40 = vmul.f32 1.442695, %v930_v39 }
 0x55f   :  { %v915_v41 = vpop.xlane.xlu0 %914 }
 0x560   :  { %4679 = vpow2.f32 %v940_v40  ;;  %v931_v48 = vsub.f32 %v5102_v3, %v915_v41 }
 0x562   :  { %v942_v54 = vmul.f32 1.442695, %v931_v48  ;;  %v1633_v48 = vld [vmem:[%s5656_s3 + $0x8] sm:$0xff] }
 0x563   :  { %v918_v42 = vpop.xlane.xlu0 %917 }
 0x564   :  { %v932_v43 = vsub.f32 %v900_v9, %v918_v42 }
 0x566   :  { %v944_v44 = vmul.f32 1.442695, %v932_v43 }
 0x567   :  { %v921_v45 = vpop.xlane.xlu1 %920 }
 0x568   :  { %4681 = vpow2.f32 %v944_v44  ;;  %v933_v55 = vsub.f32 %v5111_v16, %v921_v45 }
 0x56a   :  { %v5141_v47 = vpop.eup %4679  ;;  %v946_v63 = vmul.f32 1.442695, %v933_v55 }
 0x56b   :  { %v927_v49 = vpop.xlane.xlu1 %926  ;;  %v924_v50 = vpop.xlane.xlu0 %923  ;;  %v958_v51 = vsel %vm281_vm2, %v5141_v47, 0.0 }
 0x56c   :  { %v935_v52 = vsub.f32 %v903_v21, %v927_v49  ;;  %v934_v53 = vsub.f32 %v902_v22, %v924_v50  ;;  %959 = vadd.xlane.f32.xlu0 %v958_v51 }
 0x56e   :  { %v950_v57 = vmul.f32 1.442695, %v935_v52  ;;  %v948_v58 = vmul.f32 1.442695, %v934_v53  ;;  %v1634_v52 = vld [vmem:[%s5656_s3 + $0x10] sm:$0xff]  ;;  %v1635_v53 = vld [vmem:[%s5656_s3 + $0x18] sm:$0xff] }
 0x56f   :  { %v1069_v59 = vpop.permute.xlu1 %1068  ;;  %v993_v60 = vpop.permute.xlu0 %992 }
 0x570   :  { %4683 = vpow2.f32 %v950_v57  ;;  %4318 = vmatpush3.msra.mxu1 %v993_v60  ;;  %4323 = vmatpush3.msra.mxu0 %v1069_v59 }
 0x571   :  { %4685 = vpow2.f32 %v948_v58  ;;  %4327 = vmatprep.subr.mxu1 %v4793_v26  ;;  %4332 = vmatprep.subr.mxu0 %v4793_v26 }
 0x572   :  { %v4682_v62 = vpop.eup %4681  ;;  %4687 = vpow2.f32 %v942_v54  ;;  %v4585_v54 = vpack.c.bf16 %v1635_v53, %v1634_v52  ;;  %v1915_v52 = vld [vmem:[%s5658_s5 + $0x18] sm:$0xff] }
 0x573   :  { %v964_v0 = vsel %vm281_vm2, %v4682_v62, 0.0  ;;  %4689 = vpow2.f32 %v946_v63  ;;  %v1145_v9 = vpop.permute.xlu1 %1144  ;;  %v1297_v10 = vpop.permute.xlu0 %1296 }
 0x574   :  { %965 = vadd.xlane.f32.xlu0 %v964_v0 }
 0x577   :  { %v1221_v11 = vpop.permute.xlu1 %1220 }
 0x57a   :  { %v5150_v1 = vpop.eup %4683 }
 0x57b   :  { %v4686_v2 = vpop.eup %4685  ;;  %v973_v3 = vsel %vm281_vm2, %v5150_v1, 0.0  ;;  %v1373_v13 = vpop.permute.xlu1 %1372 }
 0x57c   :  { %v4688_v4 = vpop.eup %4687  ;;  %974 = vadd.xlane.f32.xlu1 %v973_v3  ;;  %v970_v5 = vsel %vm281_vm2, %v4686_v2, 0.0 }
 0x57d   :  { %971 = vadd.xlane.f32.xlu0 %v970_v5  ;;  %v961_v6 = vsel %vm281_vm2, %v4688_v4, 0.0  ;;  %v4690_v7 = vpop.eup %4689 }
 0x57e   :  { %v967_v8 = vsel %vm281_vm2, %v4690_v7, 0.0 }
 0x580   :  { %962 = vadd.xlane.f32.xlu1 %v961_v6 }
 0x584   :  { %968 = vadd.xlane.f32.xlu1 %v967_v8 }
 0x593   :  { %1448 = vrot.lane.b32.xlu0 %v5026_v34, %s4799_s25 }
 0x595   :  { %1524 = vrot.lane.b32.xlu1 %v5038_v37, %s4799_s25 }
 0x5a4   :  { %v954_v12 = vpop.xlane.xlu0 %953 }
 0x5a5   :  { %4691 = vrcp.f32 %v954_v12 }
 0x5ac   :  { %v957_v14 = vpop.xlane.xlu1 %956 }
 0x5ad   :  { %4693 = vrcp.f32 %v957_v14 }
 0x5af   :  { %v4692_v15 = vpop.eup %4691 }
 0x5b0   :  { %v984_v16 = vmul.f32 %v4692_v15, %v5133_v32 }
 0x5b2   :  { %4320 = vmatmul.mubr.msk.f32.vlgmr.msra.gmra.mrb[16].mxu1 %vm281_vm2, %v984_v16 }
 0x5b3   :  { %4328 = vmatpush3.msra.mxu1 %v1145_v9  ;;  %4329 = vmatprep.mubr.msk.f32.mxu1 %vm4794_vm1, %v4793_v26 }
 0x5b4   :  { %4337 = vmatprep.subr.mxu1 %v4793_v26 }
 0x5b7   :  { %v4694_v34 = vpop.eup %4693 }
 0x5b8   :  { %v985_v37 = vmul.f32 %v4694_v34, %v5137_v31 }
 0x5ba   :  { %4325 = vmatmul.mubr.msk.f32.vlgmr.msra.gmra.mrb[6].mxu0 %vm281_vm2, %v985_v37 }
 0x5bb   :  { %4333 = vmatpush3.msra.mxu0 %v1221_v11  ;;  %4334 = vmatprep.mubr.msk.f32.mxu0 %vm4794_vm1, %v4793_v26 }
 0x5bc   :  { %4342 = vmatprep.subr.mxu0 %v4793_v26 }
 0x5f9   :  { %v960_v17 = vpop.xlane.xlu0 %959 }
 0x5fa   :  { %4695 = vrcp.f32 %v960_v17 }
 0x601   :  { %v966_v18 = vpop.xlane.xlu0 %965 }
 0x602   :  { %4697 = vrcp.f32 %v966_v18 }
 0x604   :  { %v4696_v19 = vpop.eup %4695 }
 0x605   :  { %v986_v20 = vmul.f32 %v4696_v19, %v5141_v47  ;;  %v1632_v47 = vld [vmem:[%s5656_s3] sm:$0xff] }
 0x606   :  { %v4581_v50 = vpack.c.bf16 %v1633_v48, %v1632_v47  ;;  %v1912_v48 = vld [vmem:[%s5658_s5] sm:$0xff] }
 0x607   :  { %4330 = vmatmul.mubr.msk.f32.vlgmr.msra.gmra.mrb[18].mxu1 %vm281_vm2, %v986_v20 }
 0x608   :  { %4338 = vmatpush3.msra.mxu1 %v1297_v10  ;;  %4339 = vmatprep.mubr.msk.f32.mxu1 %vm4794_vm1, %v4793_v26 }
 0x609   :  { %v975_v21 = vpop.xlane.xlu1 %974  ;;  %4347 = vmatprep.subr.mxu1 %v4793_v26 }
 0x60a   :  { %v972_v22 = vpop.xlane.xlu0 %971 }
 0x60b   :  { %4699 = vrcp.f32 %v972_v22 }
 0x60c   :  { %v4698_v23 = vpop.eup %4697 }
 0x60d   :  { %v988_v24 = vmul.f32 %v4698_v23, %v4682_v62  ;;  %v963_v25 = vpop.xlane.xlu1 %962 }
 0x60e   :  { %4701 = vrcp.f32 %v963_v25  ;;  %v1449_v27 = vpop.permute.xlu0 %1448 }
 0x60f   :  { %4340 = vmatmul.mubr.msk.f32.vlgmr.msra.gmra.mrb[20].mxu1 %vm281_vm2, %v988_v24 }
 0x610   :  { %4348 = vmatpush3.msra.mxu1 %v1449_v27  ;;  %4349 = vmatprep.mubr.msk.f32.mxu1 %vm4794_vm1, %v4793_v26 }
 0x611   :  { %v969_v29 = vpop.xlane.xlu1 %968  ;;  %4582 = vmatprep.subr.bf16.mxu1 %v4581_v50 }
 0x612   :  { %4703 = vrcp.f32 %v969_v29 }
 0x613   :  { %4705 = vrcp.f32 %v975_v21 }
 0x615   :  { %v4700_v36 = vpop.eup %4699  ;;  %v1525_v35 = vpop.permute.xlu1 %1524 }
 0x616   :  { %v990_v28 = vmul.f32 %v4700_v36, %v4686_v2  ;;  %v1750_v36 = vld [vmem:[%s5657_s4] sm:$0xff] }
 0x618   :  { %v4702_v38 = vpop.eup %4701  ;;  %4350 = vmatmul.mubr.msk.f32.vlgmr.msra.gmra.mrb[22].mxu1 %vm281_vm2, %v990_v28  ;;  %v1751_v28 = vld [vmem:[%s5657_s4 + $0x8] sm:$0xff] }
 0x619   :  { %v987_v32 = vmul.f32 %v4702_v38, %v4688_v4  ;;  %4584 = vmatpush3.bf16.msra.mxu1 %v4581_v50  ;;  %v1752_v38 = vld [vmem:[%s5657_s4 + $0x10] sm:$0xff] }
 0x61a   :  { %4586 = vmatprep.subr.bf16.mxu1 %v4585_v54 }
 0x61b   :  { %4335 = vmatmul.mubr.msk.f32.vlgmr.msra.gmra.mrb[8].mxu0 %vm281_vm2, %v987_v32  ;;  %v4589_v32 = vpack.c.bf16 %v1751_v28, %v1750_v36 }
 0x61c   :  { %v4704_v30 = vpop.eup %4703  ;;  %4343 = vmatpush3.msra.mxu0 %v1373_v13  ;;  %4344 = vmatprep.mubr.msk.f32.mxu0 %vm4794_vm1, %v4793_v26  ;;  %v4032_v13 = vld [vmem:[%s5660_s7 + $0xa] ss:$0 sm:$0xff] }
 0x61d   :  { %v989_v31 = vmul.f32 %v4704_v30, %v4690_v7  ;;  %4352 = vmatprep.subr.mxu0 %v4793_v26  ;;  %v4706_v33 = vpop.eup %4705  ;;  %4588 = vmatpush3.bf16.msra.mxu1 %v4585_v54  ;;  %v1753_v30 = vld [vmem:[%s5657_s4 + $0x18] sm:$0xff]  ;;  %v1916_v54 = vld [vmem:[%s5658_s5 + $0x20] sm:$0xff] }
 0x61e   :  { %v991_v39 = vmul.f32 %v4706_v33, %v5150_v1 }
 0x61f   :  { %4345 = vmatmul.mubr.msk.f32.vlgmr.msra.gmra.mrb[10].mxu0 %vm281_vm2, %v989_v31  ;;  %v4593_v31 = vpack.c.bf16 %v1753_v30, %v1752_v38 }
 0x620   :  { %4353 = vmatpush3.msra.mxu0 %v1525_v35  ;;  %4354 = vmatprep.mubr.msk.f32.mxu0 %vm4794_vm1, %v4793_v26 }
 0x621   :  { %4590 = vmatprep.subr.bf16.mxu0 %v4589_v32 }
 0x623   :  { %4355 = vmatmul.mubr.msk.f32.vlgmr.msra.gmra.mrb[12].mxu0 %vm281_vm2, %v991_v39 }
 0x624   :  { %4592 = vmatpush3.bf16.msra.mxu0 %v4589_v32 }
 0x625   :  { %4594 = vmatprep.subr.bf16.mxu0 %v4593_v31 }
 0x628   :  { %4596 = vmatpush3.bf16.msra.mxu0 %v4593_v31 }
 0x685   :  { %v1064_v40 = vpop.f32.mrb[16].mxu1 }
 0x686   :  { %v4321_v41 = vpop.f32.mrb[17].mxu1 }
 0x68d   :  { %v1140_v42 = vpop.f32.mrb[6].mxu0 }
 0x68e   :  { %v4326_v43 = vpop.f32.mrb[7].mxu0 }
 0x6da   :  { %v1216_v44 = vpop.f32.mrb[18].mxu1 }
 0x6db   :  { %1602 = vrot.lane.b32.xlu0 %v1216_v44, %s4800_s26  ;;  %v4331_v45 = vpop.f32.mrb[19].mxu1 }
 0x6e2   :  { %v1368_v49 = vpop.f32.mrb[20].mxu1 }
 0x6e3   :  { %1610 = vrot.lane.b32.xlu0 %v1368_v49, %s4801_s9  ;;  %v4341_v51 = vpop.f32.mrb[21].mxu1  ;;  %v1913_v49 = vld [vmem:[%s5658_s5 + $0x8] sm:$0xff] }
 0x6e4   :  { %v4597_v50 = vpack.c.bf16 %v1913_v49, %v1912_v48  ;;  %v1914_v51 = vld [vmem:[%s5658_s5 + $0x10] sm:$0xff] }
 0x6e5   :  { %v4601_v53 = vpack.c.bf16 %v1915_v52, %v1914_v51 }
 0x6e6   :  { %4598 = vmatprep.subr.bf16.mxu1 %v4597_v50 }
 0x6eb   :  { %v1520_v55 = vpop.f32.mrb[22].mxu1 }
 0x6ec   :  { %1618 = vrot.lane.b32.xlu0 %v1520_v55, %s4802_s12  ;;  %v4351_v57 = vpop.f32.mrb[23].mxu1  ;;  %v1917_v55 = vld [vmem:[%s5658_s5 + $0x28] sm:$0xff] }
 0x6ed   :  { %v4605_v57 = vpack.c.bf16 %v1917_v55, %v1916_v54 }
 0x6ee   :  { %v1292_v58 = vpop.f32.mrb[8].mxu0 }
 0x6ef   :  { %1604 = vrot.lane.b32.xlu1 %v1292_v58, %s4800_s26  ;;  %v4336_v59 = vpop.f32.mrb[9].mxu0  ;;  %v1918_v58 = vld [vmem:[%s5658_s5 + $0x30] sm:$0xff] }
 0x6f0   :  { %v1919_v59 = vld [vmem:[%s5658_s5 + $0x38] sm:$0xff] }
 0x6f2   :  { %v1444_v60 = vpop.f32.mrb[10].mxu0 }
 0x6f3   :  { %1612 = vrot.lane.b32.xlu1 %v1444_v60, %s4801_s9  ;;  %v4346_v62 = vpop.f32.mrb[11].mxu0  ;;  %v4609_v60 = vpack.c.bf16 %v1919_v59, %v1918_v58 }
 0x6f4   :  { %v4035_v62 = vld [vmem:[%s5660_s7 + $0xb] ss:$0 sm:$0xff] }
 0x6f6   :  { %v1596_v63 = vpop.f32.mrb[12].mxu0 }
 0x6f7   :  { %1620 = vrot.lane.b32.xlu1 %v1596_v63, %s4802_s12  ;;  %v4356_v0 = vpop.f32.mrb[13].mxu0 }
 0x74d   :  { %v1603_v1 = vpop.permute.xlu0 %1602 }
 0x74e   :  { %v1624_v3 = vsel %vm281_vm2, %v1064_v40, %v1603_v1 }
 0x755   :  { %v1611_v2 = vpop.permute.xlu0 %1610 }
 0x756   :  { %v1627_v4 = vsel %vm1626_vm4, %v1624_v3, %v1611_v2 }
 0x75e   :  { %v1619_v5 = vpop.permute.xlu0 %1618 }
 0x75f   :  { %v1630_v6 = vsel %vm1629_vm5, %v1627_v4, %v1619_v5 }
 0x760   :  { %4365 = vmatprep.mubr.msk.f32.mxu1 %vm147_vm0, %v1630_v6 }
 0x761   :  { %v1605_v7 = vpop.permute.xlu1 %1604 }
 0x762   :  { %v1625_v9 = vsel %vm281_vm2, %v1140_v42, %v1605_v7 }
 0x765   :  { %v1613_v8 = vpop.permute.xlu1 %1612 }
 0x766   :  { %v1628_v10 = vsel %vm1626_vm4, %v1625_v9, %v1613_v8 }
 0x769   :  { %v1621_v11 = vpop.permute.xlu1 %1620 }
 0x76a   :  { %v1631_v12 = vsel %vm1629_vm5, %v1628_v10, %v1621_v11 }
 0x76b   :  { %4366 = vmatmul.mubr.msk.f32.vlgmr.msra.gmra.mrb[24].mxu1 %vm147_vm0, %v1631_v12 }
 0x76c   :  { %4600 = vmatpush3.bf16.msra.mxu1 %v4597_v50 }
 0x76d   :  { %4602 = vmatprep.subr.bf16.mxu1 %v4601_v53 }
 0x770   :  { %4604 = vmatpush3.bf16.msra.mxu1 %v4601_v53 }
 0x771   :  { %4606 = vmatprep.subr.bf16.mxu1 %v4605_v57 }
 0x774   :  { %4608 = vmatpush3.bf16.msra.mxu1 %v4605_v57 }
 0x775   :  { %4610 = vmatprep.subr.bf16.mxu1 %v4609_v60 }
 0x778   :  { %4612 = vmatpush3.bf16.msra.mxu1 %v4609_v60 }
 0x779   :  { %4419 = vmatprep.subr.mxu1 %v4793_v26 }
 0x83e   :  { %v4367_v14 = vpop.f32.mrb[24].mxu1 }
 0x83f   :  { %v1719_v15 = vadd.f32 %v4367_v14, %v4032_v13  ;;  %v1713_v16 = vpop.f32.mrb[25].mxu1 }
 0x840   :  { %v1714_v34 = vadd.f32 %v4032_v13, %v1713_v16 }
 0x841   :  { %v5219_v37 = vadd.f32 %v1719_v15, %v4965_v61 }
 0x842   :  { %v5222_v17 = vadd.f32 %v1714_v34, %v4961_v56 }
 0x843   :  { %v1727_v18 = vsel %vm147_vm0, %v5219_v37, 0.0 }
 0x844   :  { %1728 = vadd.xlane.f32.xlu1 %v1727_v18  ;;  %v1724_v19 = vsel %vm147_vm0, %v5222_v17, 0.0 }
 0x845   :  { %1725 = vadd.xlane.f32.xlu0 %v1724_v19 }
 0x8d1   :  { %v1729_v20 = vpop.xlane.xlu1 %1728 }
 0x8d2   :  { %v1731_v21 = vmul.f32 0.03125, %v1729_v20  ;;  %v1726_v22 = vpop.xlane.xlu0 %1725 }
 0x8d3   :  { %v1730_v23 = vmul.f32 0.03125, %v1726_v22 }
 0x8d4   :  { %v1733_v24 = vsub.f32 %v5219_v37, %v1731_v21 }
 0x8d5   :  { %v1732_v61 = vsub.f32 %v5222_v17, %v1730_v23 }
 0x8d6   :  { %v1735_v27 = vmul.f32 %v1733_v24, %v1733_v24 }
 0x8d7   :  { %v1734_v25 = vmul.f32 %v1732_v61, %v1732_v61 }
 0x8d8   :  { %v1739_v29 = vsel %vm147_vm0, %v1735_v27, 0.0 }
 0x8d9   :  { %v1736_v56 = vsel %vm147_vm0, %v1734_v25, 0.0 }
 0x8da   :  { %1737 = vadd.xlane.f32.xlu0 %v1736_v56 }
 0x8de   :  { %1740 = vadd.xlane.f32.xlu0 %v1739_v29 }
 0x967   :  { %v1738_v33 = vpop.xlane.xlu0 %1737 }
 0x968   :  { %v1742_v35 = vmul.f32 0.03125, %v1738_v33 }
 0x96a   :  { %v1744_v39 = vadd.f32 1e-05, %v1742_v35 }
 0x96b   :  { %v1741_v40 = vpop.xlane.xlu0 %1740 }
 0x96c   :  { %4707 = vrsqrt.f32 %v1744_v39  ;;  %v1743_v41 = vmul.f32 0.03125, %v1741_v40 }
 0x96e   :  { %v1745_v42 = vadd.f32 1e-05, %v1743_v41 }
 0x970   :  { %4709 = vrsqrt.f32 %v1745_v42 }
 0x976   :  { %v4708_v43 = vpop.eup %4707 }
 0x977   :  { %v1748_v44 = vmul.f32 %v4708_v43, %v1732_v61 }
 0x979   :  { %4376 = vmatprep.mubr.msk.f32.mxu0 %vm147_vm0, %v1748_v44 }
 0x97a   :  { %v4710_v45 = vpop.eup %4709 }
 0x97b   :  { %v1749_v47 = vmul.f32 %v4710_v45, %v1733_v24 }
 0x97d   :  { %4377 = vmatmul.mubr.msk.f32.vlgmr.msra.gmra.mrb[14].mxu0 %vm147_vm0, %v1749_v47 }
 0xa50   :  { %v4378_v63 = vpop.f32.mrb[14].mxu0 }
 0xa51   :  { %v5274_v0 = vadd.f32 %v4378_v63, %v4035_v62  ;;  %v1831_v1 = vpop.f32.mrb[15].mxu0 }
 0xa52   :  { %v5276_v2 = vadd.f32 %v4035_v62, %v1831_v1 }
 0xa53   :  { %v5279_v3 = vmul.f32 0.70710677, %v5274_v0 }
 0xa54   :  { %v5282_v4 = vmul.f32 0.70710677, %v5276_v2 }
 0xa55   :  { %v1845_v5 = vand.u32 2147483647, %v5279_v3  ;;  %vm1901_vm6 = vcmp.ge.f32.partialorder %v5279_v3, 0.0  ;;  %v4040_v3 = vld [vmem:[%s5660_s7 + $0xc] ss:$0 sm:$0xff] }
 0xa56   :  { %v1844_v6 = vand.u32 2147483647, %v5282_v4  ;;  %vm1900_vm7 = vcmp.ge.f32.partialorder %v5282_v4, 0.0 }
 0xa57   :  { %v1847_v7 = vmul.f32 0.5, %v1845_v5  ;;  %v1853_v35 = vsub.f32 0.0, %v1845_v5 }
 0xa58   :  { %v1846_v8 = vmul.f32 0.5, %v1844_v6  ;;  %v1852_v40 = vsub.f32 0.0, %v1844_v6 }
 0xa59   :  { %v1849_v9 = vadd.f32 1.0, %v1847_v7  ;;  %v1855_v44 = vmul.f32 %v1853_v35, %v1845_v5 }
 0xa5a   :  { %v1848_v10 = vadd.f32 1.0, %v1846_v8  ;;  %v1854_v47 = vmul.f32 %v1852_v40, %v1844_v6 }
 0xa5b   :  { %4711 = vrcp.f32 %v1849_v9  ;;  %v4039_v51 = vadd.f32 -1.2655122, %v1855_v44 }
 0xa5c   :  { %4713 = vrcp.f32 %v1848_v10  ;;  %v4038_v53 = vadd.f32 -1.2655122, %v1854_v47 }
 0xa65   :  { %v4712_v11 = vpop.eup %4711 }
 0xa66   :  { %v4714_v12 = vpop.eup %4713  ;;  %v1859_v13 = vmul.f32 0.17087276, %v4712_v11 }
 0xa67   :  { %v1858_v14 = vmul.f32 0.17087276, %v4714_v12 }
 0xa68   :  { %v1861_v15 = vadd.f32 -0.82215226, %v1859_v13  ;;  %v1841_v13 = vmul.f32 0.5, %v5274_v0 }
 0xa69   :  { %v1860_v16 = vadd.f32 -0.82215226, %v1858_v14 }
 0xa6a   :  { %v1863_v34 = vmul.f32 %v4712_v11, %v1861_v15  ;;  %v1840_v15 = vmul.f32 0.5, %v5276_v2 }
 0xa6b   :  { %v1862_v18 = vmul.f32 %v4714_v12, %v1860_v16 }
 0xa6c   :  { %v1865_v19 = vadd.f32 1.4885159, %v1863_v34 }
 0xa6d   :  { %v1864_v20 = vadd.f32 1.4885159, %v1862_v18 }
 0xa6e   :  { %v1867_v21 = vmul.f32 %v4712_v11, %v1865_v19 }
 0xa6f   :  { %v1866_v22 = vmul.f32 %v4714_v12, %v1864_v20 }
 0xa70   :  { %v1869_v23 = vadd.f32 -1.135204, %v1867_v21 }
 0xa71   :  { %v1868_v24 = vadd.f32 -1.135204, %v1866_v22 }
 0xa72   :  { %v1871_v61 = vmul.f32 %v4712_v11, %v1869_v23 }
 0xa73   :  { %v1870_v25 = vmul.f32 %v4714_v12, %v1868_v24 }
 0xa74   :  { %v1873_v56 = vadd.f32 0.27886808, %v1871_v61 }
 0xa75   :  { %v1872_v27 = vadd.f32 0.27886808, %v1870_v25 }
 0xa76   :  { %v1875_v29 = vmul.f32 %v4712_v11, %v1873_v56 }
 0xa77   :  { %v1874_v36 = vmul.f32 %v4714_v12, %v1872_v27 }
 0xa78   :  { %v1877_v28 = vadd.f32 -0.18628806, %v1875_v29 }
 0xa79   :  { %v1876_v38 = vadd.f32 -0.18628806, %v1874_v36  ;;  %v4043_v36 = vld [vmem:[%s5655_s2 + $0x20] sm:$0xff] }
 0xa7a   :  { %v1879_v32 = vmul.f32 %v4712_v11, %v1877_v28  ;;  %v4044_v28 = vld [vmem:[%s5655_s2 + $0x28] sm:$0xff] }
 0xa7b   :  { %v1878_v30 = vmul.f32 %v4714_v12, %v1876_v38  ;;  %v4045_v38 = vld [vmem:[%s5655_s2 + $0x30] sm:$0xff] }
 0xa7c   :  { %v1881_v31 = vadd.f32 0.09678418, %v1879_v32  ;;  %v4613_v32 = vpack.c.bf16 %v4044_v28, %v4043_v36 }
 0xa7d   :  { %v1880_v33 = vadd.f32 0.09678418, %v1878_v30  ;;  %v4046_v30 = vld [vmem:[%s5655_s2 + $0x38] sm:$0xff] }
 0xa7e   :  { %v1883_v39 = vmul.f32 %v4712_v11, %v1881_v31  ;;  %v4617_v31 = vpack.c.bf16 %v4046_v30, %v4045_v38  ;;  %4614 = vmatprep.subr.bf16.mxu0 %v4613_v32 }
 0xa7f   :  { %v1882_v41 = vmul.f32 %v4714_v12, %v1880_v33  ;;  %4616 = vmatpush3.bf16.msra.mxu0 %v4613_v32 }
 0xa80   :  { %v1885_v42 = vadd.f32 0.37409195, %v1883_v39  ;;  %4618 = vmatprep.subr.bf16.mxu0 %v4617_v31 }
 0xa81   :  { %v1884_v43 = vadd.f32 0.37409195, %v1882_v41 }
 0xa82   :  { %v1887_v45 = vmul.f32 %v4712_v11, %v1885_v42 }
 0xa83   :  { %v1886_v48 = vmul.f32 %v4714_v12, %v1884_v43  ;;  %4620 = vmatpush3.bf16.msra.mxu0 %v4617_v31 }
 0xa84   :  { %v1889_v49 = vadd.f32 1.0000237, %v1887_v45  ;;  %4409 = vmatprep.subr.mxu0 %v4793_v26 }
 0xa85   :  { %v1888_v50 = vadd.f32 1.0000237, %v1886_v48  ;;  %v4047_v48 = vld [vmem:[%s5660_s7 + $0xd] ss:$0 sm:$0xff] }
 0xa86   :  { %v1891_v52 = vmul.f32 %v4712_v11, %v1889_v49 }
 0xa87   :  { %v1890_v54 = vmul.f32 %v4714_v12, %v1888_v50 }
 0xa88   :  { %v1893_v55 = vadd.f32 %v4039_v51, %v1891_v52 }
 0xa89   :  { %v1892_v57 = vadd.f32 %v4038_v53, %v1890_v54 }
 0xa8a   :  { %v1896_v58 = vmul.f32 1.442695, %v1893_v55 }
 0xa8b   :  { %v1894_v59 = vmul.f32 1.442695, %v1892_v57 }
 0xa8c   :  { %4715 = vpow2.f32 %v1896_v58 }
 0xa8d   :  { %4717 = vpow2.f32 %v1894_v59 }
 0xa96   :  { %v4716_v60 = vpop.eup %4715 }
 0xa97   :  { %v4718_v62 = vpop.eup %4717  ;;  %v1899_v63 = vmul.f32 %v4716_v60, %v4712_v11 }
 0xa98   :  { %v1898_v1 = vmul.f32 %v4718_v62, %v4714_v12 }
 0xa99   :  { %v1903_v5 = vsub.f32 2.0, %v1899_v63 }
 0xa9a   :  { %v1902_v6 = vsub.f32 2.0, %v1898_v1 }
 0xa9b   :  { %v1905_v7 = vsel %vm1901_vm6, %v1899_v63, %v1903_v5 }
 0xa9c   :  { %v1907_v8 = vsub.f32 1.0, %v1905_v7  ;;  %v1904_v9 = vsel %vm1900_vm7, %v1898_v1, %v1902_v6 }
 0xa9d   :  { %v1906_v10 = vsub.f32 1.0, %v1904_v9 }
 0xa9e   :  { %v1909_v14 = vadd.f32 1.0, %v1907_v8 }
 0xa9f   :  { %v1908_v16 = vadd.f32 1.0, %v1906_v10 }
 0xaa0   :  { %v1911_v34 = vmul.f32 %v1909_v14, %v1841_v13 }
 0xaa1   :  { %v1910_v11 = vmul.f32 %v1908_v16, %v1840_v15 }
 0xaa3   :  { %4395 = vmatprep.mubr.msk.f32.mxu1 %vm1925_vm8, %v1910_v11 }
 0xaa4   :  { %4396 = vmatmul.mubr.msk.f32.vlgmr.msra.gmra.mrb[26].mxu1 %vm1925_vm8, %v1911_v34 }
 0xaa5   :  { %4421 = vmatprep.mubr.msk.f32.mxu1 %vm4794_vm1, %v4793_v26 }
 0xb77   :  { %v4397_v4 = vpop.f32.mrb[26].mxu1 }
 0xb78   :  { %v2004_v0 = vadd.f32 %v4397_v4, %v4040_v3  ;;  %v1998_v12 = vpop.f32.mrb[27].mxu1 }
 0xb79   :  { %v1999_v18 = vadd.f32 %v4040_v3, %v1998_v12 }
 0xb7a   :  { %v5298_v2 = vadd.f32 %v2004_v0, %v5219_v37 }
 0xb7b   :  { %v5301_v19 = vadd.f32 %v1999_v18, %v5222_v17 }
 0xb7c   :  { %v2012_v20 = vsel %vm147_vm0, %v5298_v2, 0.0 }
 0xb7d   :  { %2013 = vadd.xlane.f32.xlu1 %v2012_v20  ;;  %v2009_v21 = vsel %vm147_vm0, %v5301_v19, 0.0 }
 0xb7e   :  { %2010 = vadd.xlane.f32.xlu0 %v2009_v21 }
 0xc0a   :  { %v2014_v22 = vpop.xlane.xlu1 %2013 }
 0xc0b   :  { %v2016_v23 = vmul.f32 0.03125, %v2014_v22  ;;  %v2011_v24 = vpop.xlane.xlu0 %2010 }
 0xc0c   :  { %v2015_v61 = vmul.f32 0.03125, %v2011_v24 }
 0xc0d   :  { %v2018_v25 = vsub.f32 %v5298_v2, %v2016_v23 }
 0xc0e   :  { %v2017_v37 = vsub.f32 %v5301_v19, %v2015_v61 }
 0xc0f   :  { %v2020_v56 = vmul.f32 %v2018_v25, %v2018_v25 }
 0xc10   :  { %v2019_v27 = vmul.f32 %v2017_v37, %v2017_v37 }
 0xc11   :  { %v2024_v17 = vsel %vm147_vm0, %v2020_v56, 0.0 }
 0xc12   :  { %2025 = vadd.xlane.f32.xlu1 %v2024_v17  ;;  %v2021_v29 = vsel %vm147_vm0, %v2019_v27, 0.0 }
 0xc13   :  { %2022 = vadd.xlane.f32.xlu0 %v2021_v29 }
 0xc9f   :  { %v2026_v33 = vpop.xlane.xlu1 %2025 }
 0xca0   :  { %v2028_v35 = vmul.f32 0.03125, %v2026_v33  ;;  %v2023_v39 = vpop.xlane.xlu0 %2022 }
 0xca1   :  { %v2027_v40 = vmul.f32 0.03125, %v2023_v39 }
 0xca2   :  { %v2030_v41 = vadd.f32 1e-05, %v2028_v35 }
 0xca3   :  { %v2029_v42 = vadd.f32 1e-05, %v2027_v40 }
 0xca4   :  { %4719 = vrsqrt.f32 %v2030_v41 }
 0xca5   :  { %4721 = vrsqrt.f32 %v2029_v42 }
 0xcae   :  { %v4720_v43 = vpop.eup %4719 }
 0xcaf   :  { %v4722_v44 = vpop.eup %4721  ;;  %v2034_v47 = vmul.f32 %v4720_v43, %v2018_v25 }
 0xcb0   :  { %v2033_v45 = vmul.f32 %v4722_v44, %v2017_v37 }
 0xcb2   :  { %4406 = vmatprep.mubr.msk.f32.mxu0 %vm147_vm0, %v2033_v45 }
 0xcb3   :  { %4407 = vmatmul.mubr.msk.f32.vlgmr.msra.gmra.mrb[16].mxu0 %vm147_vm0, %v2034_v47 }
 0xcb4   :  { %4411 = vmatprep.mubr.msk.f32.mxu0 %vm4794_vm1, %v4793_v26 }
 0xd86   :  { %v4408_v49 = vpop.f32.mrb[16].mxu0 }
 0xd87   :  { %v5331_v50 = vadd.f32 %v4408_v49, %v4047_v48  ;;  %v2117_v51 = vpop.f32.mrb[17].mxu0 }
 0xd88   :  { %v5333_v52 = vadd.f32 %v4047_v48, %v2117_v51 }
 0xd89   :  { %2130 = vrot.lane.b32.xlu1 %v5331_v50, %s4795_s21 }
 0xd8a   :  { %2128 = vrot.lane.b32.xlu0 %v5333_v52, %s4795_s21 }
 0xd8d   :  { %2132 = vrot.lane.b32.xlu1 %v5333_v52, %s4796_s22 }
 0xd8e   :  { %2136 = vrot.lane.b32.xlu0 %v5333_v52, %s4797_s23 }
 0xd91   :  { %2134 = vrot.lane.b32.xlu1 %v5331_v50, %s4796_s22 }
 0xd92   :  { %2140 = vrot.lane.b32.xlu0 %v5333_v52, %s4798_s24 }
 0xd95   :  { %2138 = vrot.lane.b32.xlu1 %v5331_v50, %s4797_s23 }
 0xd99   :  { %2216 = vrot.lane.b32.xlu1 %v5331_v50, %s4798_s24 }
 0xdfb   :  { %v5351_v53 = vpop.permute.xlu1 %2130 }
 0xdfc   :  { %2368 = vrot.lane.b32.xlu1 %v5351_v53, %s4798_s24  ;;  %v5355_v54 = vpop.permute.xlu0 %2128 }
 0xdfd   :  { %2292 = vrot.lane.b32.xlu0 %v5355_v54, %s4798_s24 }
 0xdff   :  { %v5359_v55 = vpop.permute.xlu1 %2132 }
 0xe00   :  { %v5361_v57 = vpop.permute.xlu0 %2136 }
 0xe01   :  { %2444 = vrot.lane.b32.xlu0 %v5359_v55, %s4798_s24 }
 0xe03   :  { %v5365_v58 = vpop.permute.xlu1 %2134 }
 0xe04   :  { %2520 = vrot.lane.b32.xlu1 %v5365_v58, %s4798_s24  ;;  %v2141_v59 = vpop.permute.xlu0 %2140 }
 0xe05   :  { %2596 = vrot.lane.b32.xlu0 %v5361_v57, %s4798_s24  ;;  %4410 = vmatpush3.xpose.msk.msra.mxu0 %vm281_vm2, %v2141_v59 }
 0xe06   :  { %4414 = vmatprep.subr.mxu0 %v4793_v26 }
 0xe07   :  { %v5373_v60 = vpop.permute.xlu1 %2138 }
 0xe08   :  { %2672 = vrot.lane.b32.xlu1 %v5373_v60, %s4798_s24  ;;  %4412 = vmatmul.mubr.msk.f32.vlgmr.msra.gmra.mrb[18].mxu0 %vm281_vm2, %v5333_v52 }
 0xe09   :  { %4416 = vmatprep.mubr.msk.f32.mxu0 %vm4794_vm1, %v4793_v26 }
 0xe0b   :  { %v2217_v62 = vpop.permute.xlu1 %2216 }
 0xe0c   :  { %4415 = vmatpush3.xpose.msk.msra.mxu0 %vm281_vm2, %v2217_v62 }
 0xe0d   :  { %4424 = vmatprep.subr.mxu0 %v4793_v26 }
 0xe0f   :  { %4417 = vmatmul.mubr.msk.f32.vlgmr.msra.gmra.mrb[20].mxu0 %vm281_vm2, %v5331_v50 }
 0xe10   :  { %4426 = vmatprep.mubr.msk.f32.mxu0 %vm4794_vm1, %v4793_v26 }
 0xe6e   :  { %v2369_v63 = vpop.permute.xlu1 %2368 }
 0xe6f   :  { %4425 = vmatpush3.xpose.msk.msra.mxu0 %vm281_vm2, %v2369_v63  ;;  %v2293_v1 = vpop.permute.xlu0 %2292 }
 0xe70   :  { %4420 = vmatpush3.xpose.msk.msra.mxu1 %vm281_vm2, %v2293_v1  ;;  %4434 = vmatprep.subr.mxu0 %v4793_v26 }
 0xe71   :  { %4429 = vmatprep.subr.mxu1 %v4793_v26 }
 0xe72   :  { %4427 = vmatmul.mubr.msk.f32.vlgmr.msra.gmra.mrb[22].mxu0 %vm281_vm2, %v5351_v53 }
 0xe73   :  { %4422 = vmatmul.mubr.msk.f32.vlgmr.msra.gmra.mrb[28].mxu1 %vm281_vm2, %v5355_v54  ;;  %v2445_v5 = vpop.permute.xlu0 %2444  ;;  %4436 = vmatprep.mubr.msk.f32.mxu0 %vm4794_vm1, %v4793_v26 }
 0xe74   :  { %4430 = vmatpush3.xpose.msk.msra.mxu1 %vm281_vm2, %v2445_v5  ;;  %4431 = vmatprep.mubr.msk.f32.mxu1 %vm4794_vm1, %v4793_v26 }
 0xe75   :  { %4439 = vmatprep.subr.mxu1 %v4793_v26 }
 0xe76   :  { %v2521_v6 = vpop.permute.xlu1 %2520 }
 0xe77   :  { %4432 = vmatmul.mubr.msk.f32.vlgmr.msra.gmra.mrb[30].mxu1 %vm281_vm2, %v5359_v55  ;;  %4435 = vmatpush3.xpose.msk.msra.mxu0 %vm281_vm2, %v2521_v6  ;;  %v2597_v7 = vpop.permute.xlu0 %2596 }
 0xe78   :  { %4440 = vmatpush3.xpose.msk.msra.mxu1 %vm281_vm2, %v2597_v7  ;;  %4441 = vmatprep.mubr.msk.f32.mxu1 %vm4794_vm1, %v4793_v26 }
 0xe79   :  { %4444 = vmatprep.subr.mxu0 %v4793_v26  ;;  %4449 = vmatprep.subr.mxu1 %v4793_v26 }
 0xe7a   :  { %v2673_v8 = vpop.permute.xlu1 %2672  ;;  %4437 = vmatmul.mubr.msk.f32.vlgmr.msra.gmra.mrb[24].mxu0 %vm281_vm2, %v5365_v58 }
 0xe7b   :  { %4442 = vmatmul.mubr.msk.f32.vlgmr.msra.gmra.mrb[32].mxu1 %vm281_vm2, %v5361_v57  ;;  %4445 = vmatpush3.xpose.msk.msra.mxu0 %vm281_vm2, %v2673_v8 }
 0xe7c   :  { %4446 = vmatprep.mubr.msk.f32.mxu0 %vm4794_vm1, %v4793_v26  ;;  %4454 = vmatprep.subr.mxu0 %v4793_v26 }
 0xe7d   :  { %4451 = vmatprep.mubr.msk.f32.mxu1 %vm4794_vm1, %v4793_v26 }
 0xe7e   :  { %4447 = vmatmul.mubr.msk.f32.vlgmr.msra.gmra.mrb[26].mxu0 %vm281_vm2, %v5373_v60 }
 0xe7f   :  { %4456 = vmatprep.mubr.msk.f32.mxu0 %vm4794_vm1, %v4793_v26 }
 0xedb   :  { %v2212_v9 = vpop.f32.mrb[18].mxu0 }
 0xedc   :  { %v2748_v10 = vmul.f32 0.35355338, %v2212_v9  ;;  %v4413_v13 = vpop.f32.mrb[19].mxu0 }
 0xede   :  { %v2756_v14 = vsel %vm146_vm3, %v2748_v10, -1e+30 }
 0xedf   :  { %v2764_v15 = vsel %vm281_vm2, %v2756_v14, -inf }
 0xee0   :  { %2765 = vmax.xlane.f32.xlu0 %v2764_v15 }
 0xee2   :  { %v2288_v16 = vpop.f32.mrb[20].mxu0 }
 0xee3   :  { %v2749_v34 = vmul.f32 0.35355338, %v2288_v16  ;;  %v4418_v11 = vpop.f32.mrb[21].mxu0 }
 0xee5   :  { %v2757_v3 = vsel %vm146_vm3, %v2749_v34, -1e+30 }
 0xee6   :  { %v2767_v4 = vsel %vm281_vm2, %v2757_v3, -inf }
 0xee7   :  { %2768 = vmax.xlane.f32.xlu1 %v2767_v4 }
 0xf45   :  { %v2440_v0 = vpop.f32.mrb[22].mxu0 }
 0xf46   :  { %v2751_v12 = vmul.f32 0.35355338, %v2440_v0  ;;  %v2364_v18 = vpop.f32.mrb[28].mxu1  ;;  %v4428_v20 = vpop.f32.mrb[23].mxu0 }
 0xf47   :  { %v2750_v21 = vmul.f32 0.35355338, %v2364_v18  ;;  %v4423_v22 = vpop.f32.mrb[29].mxu1 }
 0xf48   :  { %v2759_v23 = vsel %vm146_vm3, %v2751_v12, -1e+30 }
 0xf49   :  { %v2773_v24 = vsel %vm281_vm2, %v2759_v23, -inf  ;;  %v2758_v25 = vsel %vm146_vm3, %v2750_v21, -1e+30 }
 0xf4a   :  { %2774 = vmax.xlane.f32.xlu0 %v2773_v24  ;;  %v2516_v61 = vpop.f32.mrb[30].mxu1  ;;  %v2770_v17 = vsel %vm281_vm2, %v2758_v25, -inf }
 0xf4b   :  { %v2752_v37 = vmul.f32 0.35355338, %v2516_v61  ;;  %v4433_v56 = vpop.f32.mrb[31].mxu1 }
 0xf4d   :  { %v2592_v27 = vpop.f32.mrb[24].mxu0  ;;  %v2760_v38 = vsel %vm146_vm3, %v2752_v37, -1e+30 }
 0xf4e   :  { %v2753_v29 = vmul.f32 0.35355338, %v2592_v27  ;;  %v4438_v36 = vpop.f32.mrb[25].mxu0  ;;  %2771 = vmax.xlane.f32.xlu0 %v2770_v17  ;;  %v2668_v28 = vpop.f32.mrb[32].mxu1  ;;  %v2776_v39 = vsel %vm281_vm2, %v2760_v38, -inf }
 0xf4f   :  { %v2754_v32 = vmul.f32 0.35355338, %v2668_v28  ;;  %v4443_v30 = vpop.f32.mrb[33].mxu1 }
 0xf50   :  { %v2761_v31 = vsel %vm146_vm3, %v2753_v29, -1e+30 }
 0xf51   :  { %v2744_v33 = vpop.f32.mrb[26].mxu0  ;;  %v2779_v35 = vsel %vm281_vm2, %v2761_v31, -inf  ;;  %v2762_v42 = vsel %vm146_vm3, %v2754_v32, -1e+30 }
 0xf52   :  { %v2755_v40 = vmul.f32 0.35355338, %v2744_v33  ;;  %2780 = vmax.xlane.f32.xlu1 %v2779_v35  ;;  %v4448_v41 = vpop.f32.mrb[27].mxu0  ;;  %2777 = vmax.xlane.f32.xlu0 %v2776_v39  ;;  %v2782_v45 = vsel %vm281_vm2, %v2762_v42, -inf }
 0xf54   :  { %v2763_v43 = vsel %vm146_vm3, %v2755_v40, -1e+30 }
 0xf55   :  { %v2785_v44 = vsel %vm281_vm2, %v2763_v43, -inf }
 0xf56   :  { %2786 = vmax.xlane.f32.xlu1 %v2785_v44  ;;  %2783 = vmax.xlane.f32.xlu0 %v2782_v45 }
 0xf67   :  { %2928 = vrot.lane.b32.xlu1 %v5331_v50, %s4799_s25 }
 0xf6b   :  { %3004 = vrot.lane.b32.xlu1 %v5355_v54, %s4799_s25 }
 0xf6c   :  { %2852 = vrot.lane.b32.xlu0 %v5333_v52, %s4799_s25 }
 0xf6d   :  { %v2766_v46 = vpop.xlane.xlu0 %2765 }
 0xf6e   :  { %v2788_v47 = vsub.f32 %v2756_v14, %v2766_v46 }
 0xf6f   :  { %3080 = vrot.lane.b32.xlu1 %v5351_v53, %s4799_s25 }
 0xf70   :  { %3156 = vrot.lane.b32.xlu0 %v5359_v55, %s4799_s25  ;;  %v2796_v48 = vmul.f32 1.442695, %v2788_v47 }
 0xf72   :  { %4723 = vpow2.f32 %v2796_v48 }
 0xf73   :  { %3232 = vrot.lane.b32.xlu1 %v5365_v58, %s4799_s25 }
 0xf74   :  { %v2769_v49 = vpop.xlane.xlu1 %2768 }
 0xf75   :  { %v2789_v50 = vsub.f32 %v2757_v3, %v2769_v49 }
 0xf77   :  { %v2798_v51 = vmul.f32 1.442695, %v2789_v50 }
 0xf79   :  { %4725 = vpow2.f32 %v2798_v51 }
 0xf7c   :  { %v5459_v54 = vpop.eup %4723 }
 0xf7d   :  { %v2812_v52 = vsel %vm281_vm2, %v5459_v54, 0.0 }
 0xf83   :  { %v5463_v53 = vpop.eup %4725 }
 0xf84   :  { %v2815_v55 = vsel %vm281_vm2, %v5463_v53, 0.0 }
 0xf8f   :  { %2813 = vadd.xlane.f32.xlu0 %v2812_v52 }
 0xf97   :  { %2816 = vadd.xlane.f32.xlu1 %v2815_v55 }
 0xfd7   :  { %v2775_v58 = vpop.xlane.xlu0 %2774 }
 0xfd8   :  { %v2791_v59 = vsub.f32 %v2759_v23, %v2775_v58 }
 0xfda   :  { %v2802_v62 = vmul.f32 1.442695, %v2791_v59 }
 0xfdb   :  { %v2772_v63 = vpop.xlane.xlu0 %2771 }
 0xfdc   :  { %4727 = vpow2.f32 %v2802_v62  ;;  %v2790_v1 = vsub.f32 %v2758_v25, %v2772_v63 }
 0xfde   :  { %v2800_v5 = vmul.f32 1.442695, %v2790_v1 }
 0xfdf   :  { %v2781_v6 = vpop.xlane.xlu1 %2780  ;;  %v2778_v7 = vpop.xlane.xlu0 %2777 }
 0xfe0   :  { %4729 = vpow2.f32 %v2800_v5  ;;  %v2793_v8 = vsub.f32 %v2761_v31, %v2781_v6  ;;  %v2792_v9 = vsub.f32 %v2760_v38, %v2778_v7  ;;  %v4074_v5 = vld [vmem:[%s5656_s3 + $0x20] sm:$0xff]  ;;  %v4075_v6 = vld [vmem:[%s5656_s3 + $0x28] sm:$0xff] }
 0xfe1   :  { %v4621_v7 = vpack.c.bf16 %v4075_v6, %v4074_v5 }
 0xfe2   :  { %v2806_v10 = vmul.f32 1.442695, %v2793_v8  ;;  %v2804_v13 = vmul.f32 1.442695, %v2792_v9  ;;  %v4076_v8 = vld [vmem:[%s5656_s3 + $0x30] sm:$0xff]  ;;  %v4077_v9 = vld [vmem:[%s5656_s3 + $0x38] sm:$0xff] }
 0xfe3   :  { %v2787_v14 = vpop.xlane.xlu1 %2786  ;;  %v2784_v15 = vpop.xlane.xlu0 %2783 }
 0xfe4   :  { %4731 = vpow2.f32 %v2806_v10  ;;  %v2795_v16 = vsub.f32 %v2763_v43, %v2787_v14  ;;  %v2794_v34 = vsub.f32 %v2762_v42, %v2784_v15  ;;  %v4625_v10 = vpack.c.bf16 %v4077_v9, %v4076_v8  ;;  %v4091_v8 = vld [vmem:[%s5658_s5 + $0x48] sm:$0xff] }
 0xfe5   :  { %4733 = vpow2.f32 %v2804_v13 }
 0xfe6   :  { %v4728_v11 = vpop.eup %4727  ;;  %v2810_v3 = vmul.f32 1.442695, %v2795_v16  ;;  %v2808_v4 = vmul.f32 1.442695, %v2794_v34 }
 0xfe7   :  { %v2929_v0 = vpop.permute.xlu1 %2928  ;;  %v2853_v12 = vpop.permute.xlu0 %2852  ;;  %v2821_v18 = vsel %vm281_vm2, %v4728_v11, 0.0 }
 0xfe8   :  { %4735 = vpow2.f32 %v2810_v3  ;;  %4455 = vmatpush3.msra.mxu0 %v2929_v0  ;;  %2822 = vadd.xlane.f32.xlu1 %v2821_v18 }
 0xfe9   :  { %4737 = vpow2.f32 %v2808_v4  ;;  %4450 = vmatpush3.msra.mxu1 %v2853_v12  ;;  %4464 = vmatprep.subr.mxu0 %v4793_v26 }
 0xfea   :  { %v4730_v20 = vpop.eup %4729  ;;  %4459 = vmatprep.subr.mxu1 %v4793_v26 }
 0xfeb   :  { %v2818_v21 = vsel %vm281_vm2, %v4730_v20, 0.0  ;;  %v3005_v17 = vpop.permute.xlu1 %3004  ;;  %v3157_v29 = vpop.permute.xlu0 %3156 }
 0xfec   :  { %2819 = vadd.xlane.f32.xlu0 %v2818_v21 }
 0xfee   :  { %v4732_v22 = vpop.eup %4731 }
 0xfef   :  { %v4734_v23 = vpop.eup %4733  ;;  %v2827_v24 = vsel %vm281_vm2, %v4732_v22, 0.0  ;;  %v3081_v36 = vpop.permute.xlu1 %3080 }
 0xff0   :  { %2828 = vadd.xlane.f32.xlu1 %v2827_v24  ;;  %v2824_v61 = vsel %vm281_vm2, %v4734_v23, 0.0 }
 0xff1   :  { %2825 = vadd.xlane.f32.xlu0 %v2824_v61 }
 0xff2   :  { %v5473_v25 = vpop.eup %4735 }
 0xff3   :  { %v5475_v37 = vpop.eup %4737  ;;  %v2833_v56 = vsel %vm281_vm2, %v5473_v25, 0.0  ;;  %v3233_v38 = vpop.permute.xlu1 %3232 }
 0xff4   :  { %2834 = vadd.xlane.f32.xlu1 %v2833_v56  ;;  %v2830_v27 = vsel %vm281_vm2, %v5475_v37, 0.0 }
 0xff5   :  { %2831 = vadd.xlane.f32.xlu0 %v2830_v27 }
0x1005   :  { %3384 = vrot.lane.b32.xlu1 %v5373_v60, %s4799_s25 }
0x100b   :  { %3308 = vrot.lane.b32.xlu0 %v5361_v57, %s4799_s25 }
0x101c   :  { %v2814_v28 = vpop.xlane.xlu0 %2813 }
0x101d   :  { %4739 = vrcp.f32 %v2814_v28  ;;  %v4078_v28 = vld [vmem:[%s5660_s7 + $0xe] ss:$0 sm:$0xff] }
0x1024   :  { %v2817_v32 = vpop.xlane.xlu1 %2816 }
0x1025   :  { %4741 = vrcp.f32 %v2817_v32 }
0x1027   :  { %v4740_v30 = vpop.eup %4739 }
0x1028   :  { %v2844_v31 = vmul.f32 %v4740_v30, %v5459_v54 }
0x102a   :  { %4452 = vmatmul.mubr.msk.f32.vlgmr.msra.gmra.mrb[34].mxu1 %vm281_vm2, %v2844_v31 }
0x102b   :  { %4460 = vmatpush3.msra.mxu1 %v3005_v17  ;;  %4461 = vmatprep.mubr.msk.f32.mxu1 %vm4794_vm1, %v4793_v26 }
0x102c   :  { %4469 = vmatprep.subr.mxu1 %v4793_v26 }
0x102f   :  { %v4742_v57 = vpop.eup %4741 }
0x1030   :  { %v2845_v60 = vmul.f32 %v4742_v57, %v5463_v53 }
0x1032   :  { %4457 = vmatmul.mubr.msk.f32.vlgmr.msra.gmra.mrb[28].mxu0 %vm281_vm2, %v2845_v60 }
0x1033   :  { %4465 = vmatpush3.msra.mxu0 %v3081_v36  ;;  %4466 = vmatprep.mubr.msk.f32.mxu0 %vm4794_vm1, %v4793_v26 }
0x1034   :  { %4474 = vmatprep.subr.mxu0 %v4793_v26 }
0x1075   :  { %v2823_v33 = vpop.xlane.xlu1 %2822 }
0x1076   :  { %4743 = vrcp.f32 %v2823_v33 }
0x1079   :  { %v2820_v35 = vpop.xlane.xlu0 %2819 }
0x107a   :  { %4745 = vrcp.f32 %v2820_v35 }
0x107d   :  { %v2829_v39 = vpop.xlane.xlu1 %2828 }
0x107e   :  { %4747 = vrcp.f32 %v2829_v39  ;;  %v2826_v40 = vpop.xlane.xlu0 %2825 }
0x107f   :  { %4749 = vrcp.f32 %v2826_v40 }
0x1080   :  { %v4744_v41 = vpop.eup %4743 }
0x1081   :  { %v2847_v42 = vmul.f32 %v4744_v41, %v4728_v11  ;;  %v2835_v43 = vpop.xlane.xlu1 %2834 }
0x1082   :  { %4751 = vrcp.f32 %v2835_v43  ;;  %v2832_v44 = vpop.xlane.xlu0 %2831 }
0x1083   :  { %4753 = vrcp.f32 %v2832_v44  ;;  %4467 = vmatmul.mubr.msk.f32.vlgmr.msra.gmra.mrb[30].mxu0 %vm281_vm2, %v2847_v42 }
0x1084   :  { %v4746_v45 = vpop.eup %4745  ;;  %4475 = vmatpush3.msra.mxu0 %v3233_v38  ;;  %4476 = vmatprep.mubr.msk.f32.mxu0 %vm4794_vm1, %v4793_v26 }
0x1085   :  { %v2846_v46 = vmul.f32 %v4746_v45, %v4730_v20  ;;  %4484 = vmatprep.subr.mxu0 %v4793_v26  ;;  %v3385_v51 = vpop.permute.xlu1 %3384 }
0x1086   :  { %v3309_v52 = vpop.permute.xlu0 %3308 }
0x1087   :  { %4462 = vmatmul.mubr.msk.f32.vlgmr.msra.gmra.mrb[36].mxu1 %vm281_vm2, %v2846_v46 }
0x1088   :  { %v4748_v47 = vpop.eup %4747  ;;  %4470 = vmatpush3.msra.mxu1 %v3157_v29  ;;  %4471 = vmatprep.mubr.msk.f32.mxu1 %vm4794_vm1, %v4793_v26 }
0x1089   :  { %v4750_v48 = vpop.eup %4749  ;;  %v2849_v49 = vmul.f32 %v4748_v47, %v4732_v22  ;;  %4479 = vmatprep.subr.mxu1 %v4793_v26  ;;  %v4081_v47 = vld [vmem:[%s5657_s4 + $0x20] sm:$0xff] }
0x108a   :  { %v2848_v50 = vmul.f32 %v4750_v48, %v4734_v23  ;;  %v4082_v48 = vld [vmem:[%s5657_s4 + $0x28] sm:$0xff] }
0x108b   :  { %4477 = vmatmul.mubr.msk.f32.vlgmr.msra.gmra.mrb[32].mxu0 %vm281_vm2, %v2849_v49  ;;  %v4083_v49 = vld [vmem:[%s5657_s4 + $0x30] sm:$0xff] }
0x108c   :  { %v4752_v54 = vpop.eup %4751  ;;  %4472 = vmatmul.mubr.msk.f32.vlgmr.msra.gmra.mrb[38].mxu1 %vm281_vm2, %v2848_v50  ;;  %4485 = vmatpush3.msra.mxu0 %v3385_v51  ;;  %v4629_v50 = vpack.c.bf16 %v4082_v48, %v4081_v47  ;;  %v4084_v51 = vld [vmem:[%s5657_s4 + $0x38] sm:$0xff] }
0x108d   :  { %v4754_v53 = vpop.eup %4753  ;;  %v2851_v55 = vmul.f32 %v4752_v54, %v5473_v25  ;;  %4480 = vmatpush3.msra.mxu1 %v3309_v52  ;;  %4481 = vmatprep.mubr.msk.f32.mxu1 %vm4794_vm1, %v4793_v26  ;;  %v4633_v54 = vpack.c.bf16 %v4084_v51, %v4083_v49 }
0x108e   :  { %v2850_v58 = vmul.f32 %v4754_v53, %v5475_v37  ;;  %4486 = vmatprep.mubr.msk.f32.mxu0 %vm4794_vm1, %v4793_v26  ;;  %4622 = vmatprep.subr.bf16.mxu1 %v4621_v7 }
0x108f   :  { %4487 = vmatmul.mubr.msk.f32.vlgmr.msra.gmra.mrb[34].mxu0 %vm281_vm2, %v2851_v55  ;;  %4630 = vmatprep.subr.bf16.mxu0 %v4629_v50 }
0x1090   :  { %4482 = vmatmul.mubr.msk.f32.vlgmr.msra.gmra.mrb[40].mxu1 %vm281_vm2, %v2850_v58  ;;  %4632 = vmatpush3.bf16.msra.mxu0 %v4629_v50 }
0x1091   :  { %4624 = vmatpush3.bf16.msra.mxu1 %v4621_v7  ;;  %4634 = vmatprep.subr.bf16.mxu0 %v4633_v54  ;;  %v4090_v7 = vld [vmem:[%s5658_s5 + $0x40] sm:$0xff] }
0x1092   :  { %4626 = vmatprep.subr.bf16.mxu1 %v4625_v10  ;;  %v4637_v9 = vpack.c.bf16 %v4091_v8, %v4090_v7 }
0x1094   :  { %4636 = vmatpush3.bf16.msra.mxu0 %v4633_v54 }
0x1095   :  { %4628 = vmatpush3.bf16.msra.mxu1 %v4625_v10  ;;  %v4092_v10 = vld [vmem:[%s5658_s5 + $0x50] sm:$0xff] }
0x1096   :  { %4638 = vmatprep.subr.bf16.mxu1 %v4637_v9 }
0x10fd   :  { %v2924_v59 = vpop.f32.mrb[34].mxu1 }
0x10fe   :  { %v4453_v62 = vpop.f32.mrb[35].mxu1 }
0x1105   :  { %v3000_v63 = vpop.f32.mrb[28].mxu0 }
0x1106   :  { %v4458_v1 = vpop.f32.mrb[29].mxu0 }
0x1156   :  { %v3152_v13 = vpop.f32.mrb[30].mxu0 }
0x1157   :  { %3464 = vrot.lane.b32.xlu1 %v3152_v13, %s4800_s26  ;;  %v4468_v14 = vpop.f32.mrb[31].mxu0  ;;  %v4093_v13 = vld [vmem:[%s5658_s5 + $0x58] sm:$0xff] }
0x1158   :  { %v4094_v14 = vld [vmem:[%s5658_s5 + $0x60] sm:$0xff] }
0x115a   :  { %v3076_v15 = vpop.f32.mrb[36].mxu1 }
0x115b   :  { %3462 = vrot.lane.b32.xlu0 %v3076_v15, %s4800_s26  ;;  %v4463_v16 = vpop.f32.mrb[37].mxu1  ;;  %v4095_v15 = vld [vmem:[%s5658_s5 + $0x68] sm:$0xff] }
0x115c   :  { %v4645_v16 = vpack.c.bf16 %v4095_v15, %v4094_v14 }
0x115e   :  { %v3304_v34 = vpop.f32.mrb[32].mxu0 }
0x115f   :  { %v3228_v11 = vpop.f32.mrb[38].mxu1  ;;  %3472 = vrot.lane.b32.xlu1 %v3304_v34, %s4801_s9  ;;  %v4478_v3 = vpop.f32.mrb[33].mxu0  ;;  %v4096_v34 = vld [vmem:[%s5658_s5 + $0x70] sm:$0xff] }
0x1160   :  { %3470 = vrot.lane.b32.xlu0 %v3228_v11, %s4801_s9  ;;  %v4473_v4 = vpop.f32.mrb[39].mxu1  ;;  %v4097_v11 = vld [vmem:[%s5658_s5 + $0x78] sm:$0xff] }
0x1161   :  { %v4649_v3 = vpack.c.bf16 %v4097_v11, %v4096_v34  ;;  %v4085_v4 = vld [vmem:[%s5660_s7 + $0xf] ss:$0 sm:$0xff] }
0x1162   :  { %v3456_v0 = vpop.f32.mrb[34].mxu0 }
0x1163   :  { %v3380_v12 = vpop.f32.mrb[40].mxu1  ;;  %3480 = vrot.lane.b32.xlu1 %v3456_v0, %s4802_s12  ;;  %v4488_v18 = vpop.f32.mrb[35].mxu0 }
0x1164   :  { %3478 = vrot.lane.b32.xlu0 %v3380_v12, %s4802_s12  ;;  %v4483_v20 = vpop.f32.mrb[41].mxu1 }
0x11c9   :  { %v3465_v21 = vpop.permute.xlu1 %3464 }
0x11ca   :  { %v3485_v61 = vsel %vm281_vm2, %v3000_v63, %v3465_v21 }
0x11cd   :  { %v3463_v22 = vpop.permute.xlu0 %3462 }
0x11ce   :  { %v3484_v25 = vsel %vm281_vm2, %v2924_v59, %v3463_v22 }
0x11d1   :  { %v3473_v23 = vpop.permute.xlu1 %3472 }
0x11d2   :  { %v3471_v24 = vpop.permute.xlu0 %3470  ;;  %v3487_v37 = vsel %vm1626_vm4, %v3485_v61, %v3473_v23 }
0x11d3   :  { %v3486_v27 = vsel %vm1626_vm4, %v3484_v25, %v3471_v24 }
0x11d5   :  { %v3481_v56 = vpop.permute.xlu1 %3480 }
0x11d6   :  { %v3489_v17 = vsel %vm1629_vm5, %v3487_v37, %v3481_v56  ;;  %v3479_v29 = vpop.permute.xlu0 %3478 }
0x11d7   :  { %v3488_v36 = vsel %vm1629_vm5, %v3486_v27, %v3479_v29 }
0x11d8   :  { %4497 = vmatprep.mubr.msk.f32.mxu1 %vm147_vm0, %v3488_v36 }
0x11d9   :  { %4498 = vmatmul.mubr.msk.f32.vlgmr.msra.gmra.mrb[42].mxu1 %vm147_vm0, %v3489_v17 }
0x11da   :  { %4640 = vmatpush3.bf16.msra.mxu1 %v4637_v9 }
0x12ac   :  { %v4499_v38 = vpop.f32.mrb[42].mxu1 }
0x12ad   :  { %v3578_v32 = vadd.f32 %v4499_v38, %v4078_v28  ;;  %v3572_v30 = vpop.f32.mrb[43].mxu1 }
0x12ae   :  { %v3573_v31 = vadd.f32 %v4078_v28, %v3572_v30 }
0x12af   :  { %v5543_v57 = vadd.f32 %v3578_v32, %v5298_v2 }
0x12b0   :  { %v5546_v60 = vadd.f32 %v3573_v31, %v5301_v19 }
0x12b1   :  { %v3586_v33 = vsel %vm147_vm0, %v5543_v57, 0.0 }
0x12b2   :  { %3587 = vadd.xlane.f32.xlu1 %v3586_v33  ;;  %v3583_v35 = vsel %vm147_vm0, %v5546_v60, 0.0 }
0x12b3   :  { %3584 = vadd.xlane.f32.xlu0 %v3583_v35 }
0x133f   :  { %v3588_v39 = vpop.xlane.xlu1 %3587 }
0x1340   :  { %v3590_v40 = vmul.f32 0.03125, %v3588_v39  ;;  %v3585_v41 = vpop.xlane.xlu0 %3584 }
0x1341   :  { %v3589_v42 = vmul.f32 0.03125, %v3585_v41 }
0x1342   :  { %v3592_v43 = vsub.f32 %v5543_v57, %v3590_v40 }
0x1343   :  { %v3591_v2 = vsub.f32 %v5546_v60, %v3589_v42 }
0x1344   :  { %v3594_v45 = vmul.f32 %v3592_v43, %v3592_v43 }
0x1345   :  { %v3593_v44 = vmul.f32 %v3591_v2, %v3591_v2 }
0x1346   :  { %v3598_v46 = vsel %vm147_vm0, %v3594_v45, 0.0 }
0x1347   :  { %v3595_v19 = vsel %vm147_vm0, %v3593_v44, 0.0 }
0x1348   :  { %3596 = vadd.xlane.f32.xlu0 %v3595_v19 }
0x134c   :  { %3599 = vadd.xlane.f32.xlu0 %v3598_v46 }
0x13d5   :  { %v3597_v52 = vpop.xlane.xlu0 %3596 }
0x13d6   :  { %v3601_v53 = vmul.f32 0.03125, %v3597_v52 }
0x13d8   :  { %v3603_v55 = vadd.f32 1e-05, %v3601_v53 }
0x13d9   :  { %v3600_v58 = vpop.xlane.xlu0 %3599 }
0x13da   :  { %4755 = vrsqrt.f32 %v3603_v55  ;;  %v3602_v59 = vmul.f32 0.03125, %v3600_v58 }
0x13dc   :  { %v3604_v62 = vadd.f32 1e-05, %v3602_v59 }
0x13de   :  { %4757 = vrsqrt.f32 %v3604_v62 }
0x13e4   :  { %v4756_v63 = vpop.eup %4755 }
0x13e5   :  { %v3607_v1 = vmul.f32 %v4756_v63, %v3591_v2 }
0x13e7   :  { %4508 = vmatprep.mubr.msk.f32.mxu0 %vm147_vm0, %v3607_v1 }
0x13e8   :  { %v4758_v5 = vpop.eup %4757 }
0x13e9   :  { %v3608_v6 = vmul.f32 %v4758_v5, %v3592_v43 }
0x13eb   :  { %4509 = vmatmul.mubr.msk.f32.vlgmr.msra.gmra.mrb[36].mxu0 %vm147_vm0, %v3608_v6 }
0x13ec   :  { %4538 = vmatprep.mubr.msk.f32.mxu0 %vm4794_vm1, %v4793_v26  ;;  %v4641_v26 = vpack.c.bf16 %v4093_v13, %v4092_v10 }
0x13ee   :  { %4642 = vmatprep.subr.bf16.mxu1 %v4641_v26 }
0x13ef   :  { %4644 = vmatpush3.bf16.msra.mxu1 %v4641_v26 }
0x13f0   :  { %4646 = vmatprep.subr.bf16.mxu1 %v4645_v16 }
0x13f3   :  { %4648 = vmatpush3.bf16.msra.mxu1 %v4645_v16 }
0x13f4   :  { %4650 = vmatprep.subr.bf16.mxu1 %v4649_v3 }
0x13f7   :  { %4652 = vmatpush3.bf16.msra.mxu1 %v4649_v3 }
0x14be   :  { %v4510_v0 = vpop.f32.mrb[36].mxu0 }
0x14bf   :  { %v5599_v12 = vadd.f32 %v4510_v0, %v4085_v4  ;;  %v3691_v18 = vpop.f32.mrb[37].mxu0 }
0x14c0   :  { %v5601_v20 = vadd.f32 %v4085_v4, %v3691_v18 }
0x14c1   :  { %v5604_v21 = vmul.f32 0.70710677, %v5599_v12 }
0x14c2   :  { %v5607_v22 = vmul.f32 0.70710677, %v5601_v20 }
0x14c3   :  { %v3705_v23 = vand.u32 2147483647, %v5604_v21  ;;  %vm3761_vm9 = vcmp.ge.f32.partialorder %v5604_v21, 0.0  ;;  %v4098_v21 = vld [vmem:[%s5660_s7 + $0x10] ss:$0 sm:$0xff] }
0x14c4   :  { %v3704_v24 = vand.u32 2147483647, %v5607_v22  ;;  %vm3760_vm10 = vcmp.ge.f32.partialorder %v5607_v22, 0.0 }
0x14c5   :  { %v3707_v61 = vmul.f32 0.5, %v3705_v23  ;;  %v3713_v54 = vsub.f32 0.0, %v3705_v23 }
0x14c6   :  { %v3706_v25 = vmul.f32 0.5, %v3704_v24  ;;  %v3712_v53 = vsub.f32 0.0, %v3704_v24 }
0x14c7   :  { %v3709_v37 = vadd.f32 1.0, %v3707_v61  ;;  %v3715_v62 = vmul.f32 %v3713_v54, %v3705_v23 }
0x14c8   :  { %v3708_v56 = vadd.f32 1.0, %v3706_v25  ;;  %v3714_v1 = vmul.f32 %v3712_v53, %v3704_v24 }
0x14c9   :  { %4759 = vrcp.f32 %v3709_v37  ;;  %v4089_v8 = vadd.f32 -1.2655122, %v3715_v62  ;;  %v3701_v37 = vmul.f32 0.5, %v5599_v12 }
0x14ca   :  { %4761 = vrcp.f32 %v3708_v56  ;;  %v4088_v10 = vadd.f32 -1.2655122, %v3714_v1  ;;  %v4101_v1 = vld [vmem:[%s5660_s7 + $0x8] ss:$0 sm:$0xff] }
0x14d3   :  { %v4760_v27 = vpop.eup %4759 }
0x14d4   :  { %v4762_v17 = vpop.eup %4761  ;;  %v3719_v29 = vmul.f32 0.17087276, %v4760_v27 }
0x14d5   :  { %v3718_v36 = vmul.f32 0.17087276, %v4762_v17 }
0x14d6   :  { %v3721_v28 = vadd.f32 -0.82215226, %v3719_v29  ;;  %v3700_v29 = vmul.f32 0.5, %v5601_v20 }
0x14d7   :  { %v3720_v38 = vadd.f32 -0.82215226, %v3718_v36 }
0x14d8   :  { %v3723_v32 = vmul.f32 %v4760_v27, %v3721_v28 }
0x14d9   :  { %v3722_v30 = vmul.f32 %v4762_v17, %v3720_v38 }
0x14da   :  { %v3725_v31 = vadd.f32 1.4885159, %v3723_v32 }
0x14db   :  { %v3724_v33 = vadd.f32 1.4885159, %v3722_v30 }
0x14dc   :  { %v3727_v35 = vmul.f32 %v4760_v27, %v3725_v31 }
0x14dd   :  { %v3726_v39 = vmul.f32 %v4762_v17, %v3724_v33 }
0x14de   :  { %v3729_v40 = vadd.f32 -1.135204, %v3727_v35 }
0x14df   :  { %v3728_v41 = vadd.f32 -1.135204, %v3726_v39 }
0x14e0   :  { %v3731_v42 = vmul.f32 %v4760_v27, %v3729_v40 }
0x14e1   :  { %v3730_v43 = vmul.f32 %v4762_v17, %v3728_v41 }
0x14e2   :  { %v3733_v2 = vadd.f32 0.27886808, %v3731_v42 }
0x14e3   :  { %v3732_v44 = vadd.f32 0.27886808, %v3730_v43 }
0x14e4   :  { %v3735_v19 = vmul.f32 %v4760_v27, %v3733_v2 }
0x14e5   :  { %v3734_v45 = vmul.f32 %v4762_v17, %v3732_v44 }
0x14e6   :  { %v3737_v46 = vadd.f32 -0.18628806, %v3735_v19 }
0x14e7   :  { %v3736_v47 = vadd.f32 -0.18628806, %v3734_v45  ;;  %v3906_v45 = vld [vmem:[%s5659_s6 + $0x8] sm:$0xff] }
0x14e8   :  { %v3739_v48 = vmul.f32 %v4760_v27, %v3737_v46 }
0x14e9   :  { %v3738_v49 = vmul.f32 %v4762_v17, %v3736_v47  ;;  %v4803_v47 = vmov 0.0|0.0  }
0x14ea   :  { %v3741_v50 = vadd.f32 0.09678418, %v3739_v48  ;;  %4653 = vmatprep.subr.bf16.mxu0 %v4803_v47  ;;  %v3907_v48 = vld [vmem:[%s5659_s6 + $0x10] sm:$0xff] }
0x14eb   :  { %v3740_v51 = vadd.f32 0.09678418, %v3738_v49  ;;  %v3908_v49 = vld [vmem:[%s5659_s6 + $0x18] sm:$0xff] }
0x14ec   :  { %v3743_v52 = vmul.f32 %v4760_v27, %v3741_v50  ;;  %v4657_v50 = vpack.c.bf16 %v3908_v49, %v3907_v48 }
0x14ed   :  { %v3742_v55 = vmul.f32 %v4762_v17, %v3740_v51 }
0x14ee   :  { %v3745_v58 = vadd.f32 0.37409195, %v3743_v52 }
0x14ef   :  { %v3744_v59 = vadd.f32 0.37409195, %v3742_v55 }
0x14f0   :  { %v3747_v63 = vmul.f32 %v4760_v27, %v3745_v58 }
0x14f1   :  { %v3746_v5 = vmul.f32 %v4762_v17, %v3744_v59 }
0x14f2   :  { %v3749_v6 = vadd.f32 1.0000237, %v3747_v63 }
0x14f3   :  { %v3748_v7 = vadd.f32 1.0000237, %v3746_v5 }
0x14f4   :  { %v3751_v9 = vmul.f32 %v4760_v27, %v3749_v6 }
0x14f5   :  { %v3750_v13 = vmul.f32 %v4762_v17, %v3748_v7 }
0x14f6   :  { %v3753_v26 = vadd.f32 %v4089_v8, %v3751_v9 }
0x14f7   :  { %v3752_v14 = vadd.f32 %v4088_v10, %v3750_v13 }
0x14f8   :  { %v3756_v15 = vmul.f32 1.442695, %v3753_v26 }
0x14f9   :  { %v3754_v16 = vmul.f32 1.442695, %v3752_v14 }
0x14fa   :  { %4763 = vpow2.f32 %v3756_v15 }
0x14fb   :  { %4765 = vpow2.f32 %v3754_v16 }
0x1504   :  { %v4764_v34 = vpop.eup %4763 }
0x1505   :  { %v4766_v11 = vpop.eup %4765  ;;  %v3759_v3 = vmul.f32 %v4764_v34, %v4760_v27 }
0x1506   :  { %v3758_v4 = vmul.f32 %v4766_v11, %v4762_v17 }
0x1507   :  { %v3763_v0 = vsub.f32 2.0, %v3759_v3 }
0x1508   :  { %v3762_v18 = vsub.f32 2.0, %v3758_v4 }
0x1509   :  { %v3765_v23 = vsel %vm3761_vm9, %v3759_v3, %v3763_v0 }
0x150a   :  { %v3767_v24 = vsub.f32 1.0, %v3765_v23  ;;  %v3764_v61 = vsel %vm3760_vm10, %v3758_v4, %v3762_v18 }
0x150b   :  { %v3766_v25 = vsub.f32 1.0, %v3764_v61 }
0x150c   :  { %v3769_v56 = vadd.f32 1.0, %v3767_v24 }
0x150d   :  { %v3768_v36 = vadd.f32 1.0, %v3766_v25 }
0x150e   :  { %v3771_v28 = vmul.f32 %v3769_v56, %v3701_v37 }
0x150f   :  { %v3770_v38 = vmul.f32 %v3768_v36, %v3700_v29 }
0x1511   :  { %4527 = vmatprep.mubr.msk.f32.mxu1 %vm1925_vm8, %v3770_v38 }
0x1512   :  { %4528 = vmatmul.mubr.msk.f32.vlgmr.msra.gmra.mrb[44].mxu1 %vm1925_vm8, %v3771_v28 }
0x15e5   :  { %v4529_v22 = vpop.f32.mrb[44].mxu1 }
0x15e6   :  { %v3864_v27 = vadd.f32 %v4529_v22, %v4098_v21  ;;  %v3858_v17 = vpop.f32.mrb[45].mxu1 }
0x15e7   :  { %v3859_v32 = vadd.f32 %v4098_v21, %v3858_v17 }
0x15e8   :  { %v3868_v12 = vadd.f32 %v3864_v27, %v5543_v57 }
0x15e9   :  { %v3867_v30 = vadd.f32 %v3859_v32, %v5546_v60  ;;  %v3905_v60 = vld [vmem:[%s5659_s6] sm:$0xff]  ;;  %s4804_s6 = smov [#allocation2]  }
0x15ea   :  { %v3871_v20 = vrot.slane %v3868_v12, 7  ;;  %v4654_v46 = vpack.c.bf16 %v3906_v45, %v3905_v60  ;;  %s3997_s14 = sshll.u32 %s4804_s6, 4  ;;  %s3998_s14 = int_to_ptr.vmem [resolvable:$true] %s3997_s14 }
0x15eb   :  { %s4769_s15 = scalar_lea.vmem %s3998_s14, 32  ;;  %p4774_p1 = scmp.lt.s32.totalorder %s3998_s14, %s3998_s14 }
0x15ec   :  { %v3873_v31 = vsel %vm3872_vm11, %v3871_v20, %v3867_v30  ;;  %4655 = vmatpush3.bf16.msra.mxu0 %v4654_v46  ;;  %p4770_p0 = scmp.ne.s32.totalorder %s3998_s14, %s4769_s15  ;;  %p4775_p2 = scmp.lt.s32.totalorder %s4769_s15, %s4769_s15 }
0x15ed   :  { %v3876_v33 = vsel %vm3875_vm12, %v3873_v31, 0.0  ;;  %4656 = vmatprep.subr.bf16.mxu0 %v4803_v47 }
0x15ee   :  { %3877 = vadd.xlane.f32.xlu0 %v3876_v33  ;;  %p4776_p3 = por %p4775_p2, %p4774_p1 }
0x15f0   :  { %4658 = vmatpush3.bf16.msra.mxu0 %v4657_v50  ;;  %p4777_p4 = pnand %p4776_p3, %p4770_p0 }
0x167b   :  { %v3878_v35 = vpop.xlane.xlu0 %3877 }
0x167c   :  { %v3879_v39 = vmul.f32 0.03125, %v3878_v35 }
0x167e   :  { %v3881_v40 = vrot.slane %v3879_v39, 1  ;;  %v3884_v41 = vsub.f32 %v3867_v30, %v3879_v39 }
0x1680   :  { %v3885_v42 = vsub.f32 %v3868_v12, %v3881_v40  ;;  %v3886_v2 = vmul.f32 %v3884_v41, %v3884_v41 }
0x1682   :  { %v3887_v43 = vmul.f32 %v3885_v42, %v3885_v42 }
0x1684   :  { %v3890_v44 = vrot.slane %v3887_v43, 7 }
0x1686   :  { %v3891_v19 = vsel %vm3872_vm11, %v3890_v44, %v3886_v2 }
0x1687   :  { %v3893_v57 = vsel %vm3875_vm12, %v3891_v19, 0.0 }
0x1688   :  { %3894 = vadd.xlane.f32.xlu1 %v3893_v57 }
0x1715   :  { %v3895_v51 = vpop.xlane.xlu1 %3894 }
0x1716   :  { %v3896_v54 = vmul.f32 0.03125, %v3895_v51 }
0x1718   :  { %v3897_v52 = vadd.f32 1e-05, %v3896_v54 }
0x171a   :  { %4767 = vrsqrt.f32 %v3897_v52 }
0x1724   :  { %v4768_v53 = vpop.eup %4767 }
0x1725   :  { %v3900_v55 = vrot.slane %v4768_v53, 1  ;;  %v3903_v59 = vmul.f32 %v4768_v53, %v3884_v41 }
0x1727   :  { %v3904_v58 = vmul.f32 %v3900_v55, %v3885_v42 }
0x1729   :  { %v3916_v62 = vrot.slane %v3904_v58, 7 }
0x172b   :  { %v3917_v63 = vsel %vm3872_vm11, %v3916_v62, %v3903_v59 }
0x172c   :  { %4539 = vmatmul.mubr.msk.f32.vlgmr.msra.gmra.mrb[38].mxu0 %vm147_vm0, %v3917_v63 }
0x17ff   :  { %v3986_v5 = vpop.f32.mrb[38].mxu0 }
0x1800   :  { %v3987_v6 = vadd.f32 %v4101_v1, %v3986_v5  ;;  %v4540_v7 = vpop.f32.mrb[39].mxu0 }
0x1802   :  { %3990 = vst [vmem:[#allocation2] sm:$0x3] %v3987_v6 }
0x1803   :  { %4780 = shalt.err (!%p4777_p4)
}
0x1804   :  { %s4781_s18 = scalar_lea.hbm %s5661_s8, 32 }
0x1805   :  { %p4782_p5 = scmp.ne.s32.totalorder %s5661_s8, %s4781_s18  ;;  %p4785_p6 = scmp.lt.u32.totalorder %s4781_s18, %s5661_s8 }
0x1807   :  { %p4787_p7 = pnand %p4785_p6, %p4782_p5 }
0x1809   :  { %4790 = shalt.err (!%p4787_p7)
}
0x180a   :  { %4000 = dma.vmem_to_hbm [thread:$0]  %s3998_s14, 32, %s5661_s8, [#allocation3]  }
0x180b   :  { %4791 = dma.done.wait [#allocation3], 32  }
0x180c   :  { %4792 = vsyncadd [#allocation3], 4294967264 }
0x180d   :  { %4004 = vsyncpa [#allocation3], 1 }

</bundles_post_ra>
